<compile_context>
chip_gen: v5e
topology: v5e:2x2
jax: 0.10.0
libtpu: 0.0.40
codegen_flags: <defaults>
</compile_context>

<pallas_src>
import numpy as np
import jax
import jax.numpy as jnp
from jax import lax
from jax.experimental import pallas as pl
from jax.experimental.pallas import tpu as pltpu


def _make_tap_masks(H, W):
    """(9, H*W) f32 masks: mask[t, y*W+x] = 1 iff tap t=(ky,kx) reads in-bounds."""
    yy, xx = np.meshgrid(np.arange(H), np.arange(W), indexing="ij")
    rows = []
    for t in range(9):
        ky, kx = divmod(t, 3)
        dy, dx = ky - 1, kx - 1
        m = ((yy + dy >= 0) & (yy + dy < H) & (xx + dx >= 0) & (xx + dx < W))
        rows.append(m.reshape(H * W).astype(np.float32))
    return jnp.asarray(np.stack(rows))


def _pick_batch_tile(N, S, target_cols=512):
    """Largest divisor of N giving >= target_cols matmul columns (lane-dense only)."""
    if S % 128 != 0:
        return 1
    want = max(1, -(-target_cols // S))          # ceil(target / S)
    best = 1
    for d in range(1, min(N, want) + 1):
        if N % d == 0:
            best = d
    return best


def make_basicblock_kernel(H, W, C, B_tile):
    S = H * W

    def build_patches(src, b, mask_ref, p_ref):
        """src: (C, S) f32 value for one image.  Writes the 9 tap row-blocks of
        the im2col matrix into p_ref columns [b*S:(b+1)*S] (lane-dense stores)."""
        for t in range(9):
            ky, kx = divmod(t, 3)
            delta = (ky - 1) * W + (kx - 1)          # flat spatial shift of tap t
            if delta == 0:
                tap = src                             # center tap: mask is all-ones
            else:
                # result[p] = src[p + delta] (wraparound is zeroed by the mask)
                shifted = pltpu.roll(src, shift=(-delta) % S, axis=1)
                tap = shifted * mask_ref[t:t + 1, :]  # (1,S) broadcast over C sublanes
            p_ref[t * C:(t + 1) * C, b * S:(b + 1) * S] = tap.astype(p_ref.dtype)

    def kernel(x_ref, mask_ref, w1_ref, s1_ref, b1_ref, w2_ref, s2_ref, b2_ref,
               out_ref, p_ref, mid_ref):
        # ---- conv1: one weight-stationary MXU matmul, K = 9*C -------------
        for b in range(B_tile):
            build_patches(x_ref[b], b, mask_ref, p_ref)
        acc1 = jnp.dot(w1_ref[...], p_ref[...].astype(jnp.bfloat16),
                       preferred_element_type=jnp.float32)            # (C, B*S) f32
        # bn1 (folded scale/shift) + relu, in f32; lane axis = B*S (lane-dense)
        mid_ref[...] = jnp.maximum(acc1 * s1_ref[...] + b1_ref[...], 0.0)

        # ---- conv2: rebuild the patch matrix (reusing p_ref) ---------------
        for b in range(B_tile):
            build_patches(mid_ref[:, b * S:(b + 1) * S], b, mask_ref, p_ref)
        acc2 = jnp.dot(w2_ref[...], p_ref[...].astype(jnp.bfloat16),
                       preferred_element_type=jnp.float32)            # (C, B*S) f32

        # forward() applies relu BEFORE bn2 -- reproduce exactly
        out2 = jnp.maximum(acc2, 0.0) * s2_ref[...] + b2_ref[...]

        # residual add (identity = the same resident NCHW block) + final relu
        for b in range(B_tile):
            out_ref[b] = jnp.maximum(out2[:, b * S:(b + 1) * S] + x_ref[b], 0.0)

    return kernel


def basic_block_pallas(x_nchw, w1_hwio, scale1, shift1, w2_hwio, scale2, shift2,
                       *, batch_tile=None):
    N, Cin, H, W = x_nchw.shape
    Cout = w1_hwio.shape[-1]
    assert Cin == Cout, "residual add requires inplanes == planes (downsample=None)"
    C = Cout
    S = H * W

    B_tile = batch_tile if batch_tile is not None else _pick_batch_tile(N, S)
    assert N % B_tile == 0

    # Input stays in its natural NCHW layout; (N, C, H*W) is a free reshape.
    x_flat = x_nchw.astype(jnp.float32).reshape(N, C, S)

    # Tap-major weights, weight-stationary orientation, bf16 (MXU-native):
    # w_mat[o, (3*ky+kx)*C + c] == W_torch[o, c, ky, kx]
    w1_mat = w1_hwio.reshape(9 * C, C).T.astype(jnp.bfloat16)          # (Cout, 9Cin)
    w2_mat = w2_hwio.reshape(9 * C, C).T.astype(jnp.bfloat16)          # (Cout, 9Cout)

    # BN params broadcast along the lane (spatial) axis.
    s1 = scale1.reshape(C, 1).astype(jnp.float32)
    b1 = shift1.reshape(C, 1).astype(jnp.float32)
    s2 = scale2.reshape(C, 1).astype(jnp.float32)
    b2 = shift2.reshape(C, 1).astype(jnp.float32)

    mask = _make_tap_masks(H, W)                                        # (9, S) f32

    # Patch scratch: bf16 when the per-tap row offsets are 16-aligned (packed
    # sublane stores stay aligned), f32 otherwise (e.g. the C=8 demo).
    p_dtype = jnp.bfloat16 if C % 16 == 0 else jnp.float32

    kernel = make_basicblock_kernel(H, W, C, B_tile)

    out_flat = pl.pallas_call(
        kernel,
        out_shape=jax.ShapeDtypeStruct((N, C, S), jnp.float32),
        grid_spec=pltpu.PrefetchScalarGridSpec(
            num_scalar_prefetch=0,
            grid=(N // B_tile,),
            in_specs=[
                pl.BlockSpec((B_tile, C, S), lambda n: (n, 0, 0)),   # x (+ identity)
                pl.BlockSpec((9, S), lambda n: (0, 0)),              # boundary masks
                pl.BlockSpec((C, 9 * C), lambda n: (0, 0)),          # conv1 weight
                pl.BlockSpec((C, 1), lambda n: (0, 0)),              # bn1 scale
                pl.BlockSpec((C, 1), lambda n: (0, 0)),              # bn1 shift
                pl.BlockSpec((C, 9 * C), lambda n: (0, 0)),          # conv2 weight
                pl.BlockSpec((C, 1), lambda n: (0, 0)),              # bn2 scale
                pl.BlockSpec((C, 1), lambda n: (0, 0)),              # bn2 shift
            ],
            out_specs=pl.BlockSpec((B_tile, C, S), lambda n: (n, 0, 0)),
            scratch_shapes=[
                pltpu.VMEM((9 * C, B_tile * S), p_dtype),            # im2col patches
                pltpu.VMEM((C, B_tile * S), jnp.float32),            # conv1 output
            ],
        ),
        compiler_params=pltpu.CompilerParams(
            dimension_semantics=("parallel",),
            # Demo working set is ~0.3 MiB; 32 MiB keeps comfortable headroom on
            # every chip (well under the 64 MiB v7x VMEM ceiling).
            vmem_limit_bytes=32 * 1024 * 1024,
        ),
    )(x_flat, mask, w1_mat, s1, b1, w2_mat, s2, b2)

    # (N, C, H*W) -> NCHW is a free reshape (no transpose / slice pass in HBM).
    return out_flat.reshape(N, C, H, W)


def basic_block_ref(x_nchw, w1_hwio, scale1, shift1, w2_hwio, scale2, shift2):
    """Pure-JAX reference mirroring the kernel's precision choices
    (bf16 conv operands, f32 accumulation / BN / residual)."""
    dn = ("NHWC", "HWIO", "NHWC")
    x = jnp.transpose(x_nchw, (0, 2, 3, 1)).astype(jnp.float32)
    o = lax.conv_general_dilated(
        x.astype(jnp.bfloat16), w1_hwio.astype(jnp.bfloat16),
        (1, 1), ((1, 1), (1, 1)), dimension_numbers=dn,
        preferred_element_type=jnp.float32)
    o = jnp.maximum(o * scale1 + shift1, 0.0)
    o = lax.conv_general_dilated(
        o.astype(jnp.bfloat16), w2_hwio.astype(jnp.bfloat16),
        (1, 1), ((1, 1), (1, 1)), dimension_numbers=dn,
        preferred_element_type=jnp.float32)
    o = jnp.maximum(o, 0.0)                 # relu before bn2, as in forward()
    o = o * scale2 + shift2
    o = jnp.maximum(o + x, 0.0)
    return jnp.transpose(o, (0, 3, 1, 2))


if __name__ == "__main__":
    # Small shapes: batch=2, inplanes=planes=8, spatial=16x16 (stride=1,
    # downsample=None as in the default BasicBlock instantiation).
    N, C, H, W = 2, 8, 16, 16
    key = jax.random.PRNGKey(0)
    keys = jax.random.split(key, 11)

    x = jax.random.normal(keys[0], (N, C, H, W), dtype=jnp.float32)

    # Deterministic synthetic parameters (conv weights HWIO; BN eval stats).
    w1_hwio = 0.1 * jax.random.normal(keys[1], (3, 3, C, C), dtype=jnp.float32)
    w2_hwio = 0.1 * jax.random.normal(keys[2], (3, 3, C, C), dtype=jnp.float32)

    eps = 1e-5
    gamma1 = 1.0 + 0.1 * jax.random.normal(keys[3], (C,), dtype=jnp.float32)
    beta1 = 0.1 * jax.random.normal(keys[4], (C,), dtype=jnp.float32)
    mean1 = 0.1 * jax.random.normal(keys[5], (C,), dtype=jnp.float32)
    var1 = jax.random.uniform(keys[6], (C,), minval=0.5, maxval=1.5)
    gamma2 = 1.0 + 0.1 * jax.random.normal(keys[7], (C,), dtype=jnp.float32)
    beta2 = 0.1 * jax.random.normal(keys[8], (C,), dtype=jnp.float32)
    mean2 = 0.1 * jax.random.normal(keys[9], (C,), dtype=jnp.float32)
    var2 = jax.random.uniform(keys[10], (C,), minval=0.5, maxval=1.5)

    scale1 = gamma1 / jnp.sqrt(var1 + eps)
    shift1 = beta1 - mean1 * scale1
    scale2 = gamma2 / jnp.sqrt(var2 + eps)
    shift2 = beta2 - mean2 * scale2

    out = basic_block_pallas(x, w1_hwio, scale1, shift1, w2_hwio, scale2, shift2)
    out = jax.block_until_ready(out)

    ref = basic_block_ref(x, w1_hwio, scale1, shift1, w2_hwio, scale2, shift2)
    assert out.shape == (N, C, H, W)
    max_err = float(jnp.max(jnp.abs(out - ref)))
    assert max_err < 5e-3, f"mismatch vs JAX reference: {max_err}"

    print("KERNEL_OK")
</pallas_src>

<mosaic_0001>
module attributes {stable_mosaic.version = 11 : i64} {
  func.func @kernel(%arg0: i32, %arg1: memref<2x8x256xf32, #tpu.memory_space<vmem>>, %arg2: memref<9x256xf32, #tpu.memory_space<vmem>>, %arg3: memref<8x72xbf16, #tpu.memory_space<vmem>>, %arg4: memref<8x1xf32, #tpu.memory_space<vmem>>, %arg5: memref<8x1xf32, #tpu.memory_space<vmem>>, %arg6: memref<8x72xbf16, #tpu.memory_space<vmem>>, %arg7: memref<8x1xf32, #tpu.memory_space<vmem>>, %arg8: memref<8x1xf32, #tpu.memory_space<vmem>>, %arg9: memref<2x8x256xf32, #tpu.memory_space<vmem>>, %arg10: memref<72x512xf32, #tpu.memory_space<vmem>>, %arg11: memref<8x512xf32, #tpu.memory_space<vmem>>) attributes {dimension_semantics = [#tpu.dimension_semantics<parallel>], iteration_bounds = array<i64: 1>, scalar_prefetch = 0 : i64, scratch_operands = 2 : i64, tpu.core_type = #tpu.core_type<tc>, window_params = [{transform_indices = @transform_0, window_bounds = array<i64: 2, 8, 256>}, {pipeline_mode = #tpu.pipeline_mode<synchronous>, transform_indices = @transform_1, window_bounds = array<i64: 9, 256>}, {pipeline_mode = #tpu.pipeline_mode<synchronous>, transform_indices = @transform_2, window_bounds = array<i64: 8, 72>}, {pipeline_mode = #tpu.pipeline_mode<synchronous>, transform_indices = @transform_3, window_bounds = array<i64: 8, 1>}, {pipeline_mode = #tpu.pipeline_mode<synchronous>, transform_indices = @transform_4, window_bounds = array<i64: 8, 1>}, {pipeline_mode = #tpu.pipeline_mode<synchronous>, transform_indices = @transform_5, window_bounds = array<i64: 8, 72>}, {pipeline_mode = #tpu.pipeline_mode<synchronous>, transform_indices = @transform_6, window_bounds = array<i64: 8, 1>}, {pipeline_mode = #tpu.pipeline_mode<synchronous>, transform_indices = @transform_7, window_bounds = array<i64: 8, 1>}, {transform_indices = @transform_8, window_bounds = array<i64: 2, 8, 256>}]} {
    %c0 = arith.constant 0 : index
    %c0_0 = arith.constant 0 : index
    %c0_1 = arith.constant 0 : index
    %0 = vector.load %arg1[%c0, %c0_0, %c0_1] : memref<2x8x256xf32, #tpu.memory_space<vmem>>, vector<1x8x256xf32>
    %1 = vector.shape_cast %0 : vector<1x8x256xf32> to vector<8x256xf32>
    %c17_i32 = arith.constant 17 : i32
    %2 = tpu.dynamic_rotate %1 by %c17_i32 dim 1 : vector<8x256xf32>, i32 -> vector<8x256xf32>
    %c0_2 = arith.constant 0 : index
    %c0_3 = arith.constant 0 : index
    %3 = vector.load %arg2[%c0_2, %c0_3] : memref<9x256xf32, #tpu.memory_space<vmem>>, vector<1x256xf32>
    %4 = vector.broadcast %3 : vector<1x256xf32> to vector<8x256xf32>
    %5 = arith.mulf %2, %4 : vector<8x256xf32>
    %c0_4 = arith.constant 0 : index
    %c0_5 = arith.constant 0 : index
    %6 = vector.load %arg10[%c0_4, %c0_5] : memref<72x512xf32, #tpu.memory_space<vmem>>, vector<8x256xf32>
    tpu.vector_store %arg10[%c0_4, %c0_5], %5 {strides = array<i32>} : memref<72x512xf32, #tpu.memory_space<vmem>>, vector<8x256xf32>,
    %c16_i32 = arith.constant 16 : i32
    %7 = tpu.dynamic_rotate %1 by %c16_i32 dim 1 : vector<8x256xf32>, i32 -> vector<8x256xf32>
    %c1 = arith.constant 1 : index
    %c0_6 = arith.constant 0 : index
    %8 = vector.load %arg2[%c1, %c0_6] : memref<9x256xf32, #tpu.memory_space<vmem>>, vector<1x256xf32>
    %9 = vector.broadcast %8 : vector<1x256xf32> to vector<8x256xf32>
    %10 = arith.mulf %7, %9 : vector<8x256xf32>
    %c8 = arith.constant 8 : index
    %c0_7 = arith.constant 0 : index
    %11 = vector.load %arg10[%c8, %c0_7] : memref<72x512xf32, #tpu.memory_space<vmem>>, vector<8x256xf32>
    tpu.vector_store %arg10[%c8, %c0_7], %10 {strides = array<i32>} : memref<72x512xf32, #tpu.memory_space<vmem>>, vector<8x256xf32>,
    %c15_i32 = arith.constant 15 : i32
    %12 = tpu.dynamic_rotate %1 by %c15_i32 dim 1 : vector<8x256xf32>, i32 -> vector<8x256xf32>
    %c2 = arith.constant 2 : index
    %c0_8 = arith.constant 0 : index
    %13 = vector.load %arg2[%c2, %c0_8] : memref<9x256xf32, #tpu.memory_space<vmem>>, vector<1x256xf32>
    %14 = vector.broadcast %13 : vector<1x256xf32> to vector<8x256xf32>
    %15 = arith.mulf %12, %14 : vector<8x256xf32>
    %c16 = arith.constant 16 : index
    %c0_9 = arith.constant 0 : index
    %16 = vector.load %arg10[%c16, %c0_9] : memref<72x512xf32, #tpu.memory_space<vmem>>, vector<8x256xf32>
    tpu.vector_store %arg10[%c16, %c0_9], %15 {strides = array<i32>} : memref<72x512xf32, #tpu.memory_space<vmem>>, vector<8x256xf32>,
    %c1_i32 = arith.constant 1 : i32
    %17 = tpu.dynamic_rotate %1 by %c1_i32 dim 1 : vector<8x256xf32>, i32 -> vector<8x256xf32>
    %c3 = arith.constant 3 : index
    %c0_10 = arith.constant 0 : index
    %18 = vector.load %arg2[%c3, %c0_10] : memref<9x256xf32, #tpu.memory_space<vmem>>, vector<1x256xf32>
    %19 = vector.broadcast %18 : vector<1x256xf32> to vector<8x256xf32>
    %20 = arith.mulf %17, %19 : vector<8x256xf32>
    %c24 = arith.constant 24 : index
    %c0_11 = arith.constant 0 : index
    %21 = vector.load %arg10[%c24, %c0_11] : memref<72x512xf32, #tpu.memory_space<vmem>>, vector<8x256xf32>
    tpu.vector_store %arg10[%c24, %c0_11], %20 {strides = array<i32>} : memref<72x512xf32, #tpu.memory_space<vmem>>, vector<8x256xf32>,
    %c32 = arith.constant 32 : index
    %c0_12 = arith.constant 0 : index
    %22 = vector.load %arg10[%c32, %c0_12] : memref<72x512xf32, #tpu.memory_space<vmem>>, vector<8x256xf32>
    tpu.vector_store %arg10[%c32, %c0_12], %1 {strides = array<i32>} : memref<72x512xf32, #tpu.memory_space<vmem>>, vector<8x256xf32>,
    %c255_i32 = arith.constant 255 : i32
    %23 = tpu.dynamic_rotate %1 by %c255_i32 dim 1 : vector<8x256xf32>, i32 -> vector<8x256xf32>
    %c5 = arith.constant 5 : index
    %c0_13 = arith.constant 0 : index
    %24 = vector.load %arg2[%c5, %c0_13] : memref<9x256xf32, #tpu.memory_space<vmem>>, vector<1x256xf32>
    %25 = vector.broadcast %24 : vector<1x256xf32> to vector<8x256xf32>
    %26 = arith.mulf %23, %25 : vector<8x256xf32>
    %c40 = arith.constant 40 : index
    %c0_14 = arith.constant 0 : index
    %27 = vector.load %arg10[%c40, %c0_14] : memref<72x512xf32, #tpu.memory_space<vmem>>, vector<8x256xf32>
    tpu.vector_store %arg10[%c40, %c0_14], %26 {strides = array<i32>} : memref<72x512xf32, #tpu.memory_space<vmem>>, vector<8x256xf32>,
    %c241_i32 = arith.constant 241 : i32
    %28 = tpu.dynamic_rotate %1 by %c241_i32 dim 1 : vector<8x256xf32>, i32 -> vector<8x256xf32>
    %c6 = arith.constant 6 : index
    %c0_15 = arith.constant 0 : index
    %29 = vector.load %arg2[%c6, %c0_15] : memref<9x256xf32, #tpu.memory_space<vmem>>, vector<1x256xf32>
    %30 = vector.broadcast %29 : vector<1x256xf32> to vector<8x256xf32>
    %31 = arith.mulf %28, %30 : vector<8x256xf32>
    %c48 = arith.constant 48 : index
    %c0_16 = arith.constant 0 : index
    %32 = vector.load %arg10[%c48, %c0_16] : memref<72x512xf32, #tpu.memory_space<vmem>>, vector<8x256xf32>
    tpu.vector_store %arg10[%c48, %c0_16], %31 {strides = array<i32>} : memref<72x512xf32, #tpu.memory_space<vmem>>, vector<8x256xf32>,
    %c240_i32 = arith.constant 240 : i32
    %33 = tpu.dynamic_rotate %1 by %c240_i32 dim 1 : vector<8x256xf32>, i32 -> vector<8x256xf32>
    %c7 = arith.constant 7 : index
    %c0_17 = arith.constant 0 : index
    %34 = vector.load %arg2[%c7, %c0_17] : memref<9x256xf32, #tpu.memory_space<vmem>>, vector<1x256xf32>
    %35 = vector.broadcast %34 : vector<1x256xf32> to vector<8x256xf32>
    %36 = arith.mulf %33, %35 : vector<8x256xf32>
    %c56 = arith.constant 56 : index
    %c0_18 = arith.constant 0 : index
    %37 = vector.load %arg10[%c56, %c0_18] : memref<72x512xf32, #tpu.memory_space<vmem>>, vector<8x256xf32>
    tpu.vector_store %arg10[%c56, %c0_18], %36 {strides = array<i32>} : memref<72x512xf32, #tpu.memory_space<vmem>>, vector<8x256xf32>,
    %c239_i32 = arith.constant 239 : i32
    %38 = tpu.dynamic_rotate %1 by %c239_i32 dim 1 : vector<8x256xf32>, i32 -> vector<8x256xf32>
    %c8_19 = arith.constant 8 : index
    %c0_20 = arith.constant 0 : index
    %39 = vector.load %arg2[%c8_19, %c0_20] : memref<9x256xf32, #tpu.memory_space<vmem>>, vector<1x256xf32>
    %40 = vector.broadcast %39 : vector<1x256xf32> to vector<8x256xf32>
    %41 = arith.mulf %38, %40 : vector<8x256xf32>
    %c64 = arith.constant 64 : index
    %c0_21 = arith.constant 0 : index
    %42 = vector.load %arg10[%c64, %c0_21] : memref<72x512xf32, #tpu.memory_space<vmem>>, vector<8x256xf32>
    tpu.vector_store %arg10[%c64, %c0_21], %41 {strides = array<i32>} : memref<72x512xf32, #tpu.memory_space<vmem>>, vector<8x256xf32>,
    %c1_22 = arith.constant 1 : index
    %c0_23 = arith.constant 0 : index
    %c0_24 = arith.constant 0 : index
    %43 = vector.load %arg1[%c1_22, %c0_23, %c0_24] : memref<2x8x256xf32, #tpu.memory_space<vmem>>, vector<1x8x256xf32>
    %44 = vector.shape_cast %43 : vector<1x8x256xf32> to vector<8x256xf32>
    %c17_i32_25 = arith.constant 17 : i32
    %45 = tpu.dynamic_rotate %44 by %c17_i32_25 dim 1 : vector<8x256xf32>, i32 -> vector<8x256xf32>
    %c0_26 = arith.constant 0 : index
    %c0_27 = arith.constant 0 : index
    %46 = vector.load %arg2[%c0_26, %c0_27] : memref<9x256xf32, #tpu.memory_space<vmem>>, vector<1x256xf32>
    %47 = vector.broadcast %46 : vector<1x256xf32> to vector<8x256xf32>
    %48 = arith.mulf %45, %47 : vector<8x256xf32>
    %c0_28 = arith.constant 0 : index
    %c256 = arith.constant 256 : index
    %49 = vector.load %arg10[%c0_28, %c256] : memref<72x512xf32, #tpu.memory_space<vmem>>, vector<8x256xf32>
    tpu.vector_store %arg10[%c0_28, %c256], %48 {strides = array<i32>} : memref<72x512xf32, #tpu.memory_space<vmem>>, vector<8x256xf32>,
    %c16_i32_29 = arith.constant 16 : i32
    %50 = tpu.dynamic_rotate %44 by %c16_i32_29 dim 1 : vector<8x256xf32>, i32 -> vector<8x256xf32>
    %c1_30 = arith.constant 1 : index
    %c0_31 = arith.constant 0 : index
    %51 = vector.load %arg2[%c1_30, %c0_31] : memref<9x256xf32, #tpu.memory_space<vmem>>, vector<1x256xf32>
    %52 = vector.broadcast %51 : vector<1x256xf32> to vector<8x256xf32>
    %53 = arith.mulf %50, %52 : vector<8x256xf32>
    %c8_32 = arith.constant 8 : index
    %c256_33 = arith.constant 256 : index
    %54 = vector.load %arg10[%c8_32, %c256_33] : memref<72x512xf32, #tpu.memory_space<vmem>>, vector<8x256xf32>
    tpu.vector_store %arg10[%c8_32, %c256_33], %53 {strides = array<i32>} : memref<72x512xf32, #tpu.memory_space<vmem>>, vector<8x256xf32>,
    %c15_i32_34 = arith.constant 15 : i32
    %55 = tpu.dynamic_rotate %44 by %c15_i32_34 dim 1 : vector<8x256xf32>, i32 -> vector<8x256xf32>
    %c2_35 = arith.constant 2 : index
    %c0_36 = arith.constant 0 : index
    %56 = vector.load %arg2[%c2_35, %c0_36] : memref<9x256xf32, #tpu.memory_space<vmem>>, vector<1x256xf32>
    %57 = vector.broadcast %56 : vector<1x256xf32> to vector<8x256xf32>
    %58 = arith.mulf %55, %57 : vector<8x256xf32>
    %c16_37 = arith.constant 16 : index
    %c256_38 = arith.constant 256 : index
    %59 = vector.load %arg10[%c16_37, %c256_38] : memref<72x512xf32, #tpu.memory_space<vmem>>, vector<8x256xf32>
    tpu.vector_store %arg10[%c16_37, %c256_38], %58 {strides = array<i32>} : memref<72x512xf32, #tpu.memory_space<vmem>>, vector<8x256xf32>,
    %c1_i32_39 = arith.constant 1 : i32
    %60 = tpu.dynamic_rotate %44 by %c1_i32_39 dim 1 : vector<8x256xf32>, i32 -> vector<8x256xf32>
    %c3_40 = arith.constant 3 : index
    %c0_41 = arith.constant 0 : index
    %61 = vector.load %arg2[%c3_40, %c0_41] : memref<9x256xf32, #tpu.memory_space<vmem>>, vector<1x256xf32>
    %62 = vector.broadcast %61 : vector<1x256xf32> to vector<8x256xf32>
    %63 = arith.mulf %60, %62 : vector<8x256xf32>
    %c24_42 = arith.constant 24 : index
    %c256_43 = arith.constant 256 : index
    %64 = vector.load %arg10[%c24_42, %c256_43] : memref<72x512xf32, #tpu.memory_space<vmem>>, vector<8x256xf32>
    tpu.vector_store %arg10[%c24_42, %c256_43], %63 {strides = array<i32>} : memref<72x512xf32, #tpu.memory_space<vmem>>, vector<8x256xf32>,
    %c32_44 = arith.constant 32 : index
    %c256_45 = arith.constant 256 : index
    %65 = vector.load %arg10[%c32_44, %c256_45] : memref<72x512xf32, #tpu.memory_space<vmem>>, vector<8x256xf32>
    tpu.vector_store %arg10[%c32_44, %c256_45], %44 {strides = array<i32>} : memref<72x512xf32, #tpu.memory_space<vmem>>, vector<8x256xf32>,
    %c255_i32_46 = arith.constant 255 : i32
    %66 = tpu.dynamic_rotate %44 by %c255_i32_46 dim 1 : vector<8x256xf32>, i32 -> vector<8x256xf32>
    %c5_47 = arith.constant 5 : index
    %c0_48 = arith.constant 0 : index
    %67 = vector.load %arg2[%c5_47, %c0_48] : memref<9x256xf32, #tpu.memory_space<vmem>>, vector<1x256xf32>
    %68 = vector.broadcast %67 : vector<1x256xf32> to vector<8x256xf32>
    %69 = arith.mulf %66, %68 : vector<8x256xf32>
    %c40_49 = arith.constant 40 : index
    %c256_50 = arith.constant 256 : index
    %70 = vector.load %arg10[%c40_49, %c256_50] : memref<72x512xf32, #tpu.memory_space<vmem>>, vector<8x256xf32>
    tpu.vector_store %arg10[%c40_49, %c256_50], %69 {strides = array<i32>} : memref<72x512xf32, #tpu.memory_space<vmem>>, vector<8x256xf32>,
    %c241_i32_51 = arith.constant 241 : i32
    %71 = tpu.dynamic_rotate %44 by %c241_i32_51 dim 1 : vector<8x256xf32>, i32 -> vector<8x256xf32>
    %c6_52 = arith.constant 6 : index
    %c0_53 = arith.constant 0 : index
    %72 = vector.load %arg2[%c6_52, %c0_53] : memref<9x256xf32, #tpu.memory_space<vmem>>, vector<1x256xf32>
    %73 = vector.broadcast %72 : vector<1x256xf32> to vector<8x256xf32>
    %74 = arith.mulf %71, %73 : vector<8x256xf32>
    %c48_54 = arith.constant 48 : index
    %c256_55 = arith.constant 256 : index
    %75 = vector.load %arg10[%c48_54, %c256_55] : memref<72x512xf32, #tpu.memory_space<vmem>>, vector<8x256xf32>
    tpu.vector_store %arg10[%c48_54, %c256_55], %74 {strides = array<i32>} : memref<72x512xf32, #tpu.memory_space<vmem>>, vector<8x256xf32>,
    %c240_i32_56 = arith.constant 240 : i32
    %76 = tpu.dynamic_rotate %44 by %c240_i32_56 dim 1 : vector<8x256xf32>, i32 -> vector<8x256xf32>
    %c7_57 = arith.constant 7 : index
    %c0_58 = arith.constant 0 : index
    %77 = vector.load %arg2[%c7_57, %c0_58] : memref<9x256xf32, #tpu.memory_space<vmem>>, vector<1x256xf32>
    %78 = vector.broadcast %77 : vector<1x256xf32> to vector<8x256xf32>
    %79 = arith.mulf %76, %78 : vector<8x256xf32>
    %c56_59 = arith.constant 56 : index
    %c256_60 = arith.constant 256 : index
    %80 = vector.load %arg10[%c56_59, %c256_60] : memref<72x512xf32, #tpu.memory_space<vmem>>, vector<8x256xf32>
    tpu.vector_store %arg10[%c56_59, %c256_60], %79 {strides = array<i32>} : memref<72x512xf32, #tpu.memory_space<vmem>>, vector<8x256xf32>,
    %c239_i32_61 = arith.constant 239 : i32
    %81 = tpu.dynamic_rotate %44 by %c239_i32_61 dim 1 : vector<8x256xf32>, i32 -> vector<8x256xf32>
    %c8_62 = arith.constant 8 : index
    %c0_63 = arith.constant 0 : index
    %82 = vector.load %arg2[%c8_62, %c0_63] : memref<9x256xf32, #tpu.memory_space<vmem>>, vector<1x256xf32>
    %83 = vector.broadcast %82 : vector<1x256xf32> to vector<8x256xf32>
    %84 = arith.mulf %81, %83 : vector<8x256xf32>
    %c64_64 = arith.constant 64 : index
    %c256_65 = arith.constant 256 : index
    %85 = vector.load %arg10[%c64_64, %c256_65] : memref<72x512xf32, #tpu.memory_space<vmem>>, vector<8x256xf32>
    tpu.vector_store %arg10[%c64_64, %c256_65], %84 {strides = array<i32>} : memref<72x512xf32, #tpu.memory_space<vmem>>, vector<8x256xf32>,
    %c0_66 = arith.constant 0 : index
    %c0_67 = arith.constant 0 : index
    %86 = vector.load %arg3[%c0_66, %c0_67] : memref<8x72xbf16, #tpu.memory_space<vmem>>, vector<8x72xbf16>
    %c0_68 = arith.constant 0 : index
    %c0_69 = arith.constant 0 : index
    %87 = vector.load %arg10[%c0_68, %c0_69] : memref<72x512xf32, #tpu.memory_space<vmem>>, vector<72x512xf32>
    %88 = arith.truncf %87 : vector<72x512xf32> to vector<72x512xbf16>
    %cst = arith.constant dense<0.000000e+00> : vector<8x512xf32>
    %89 = tpu.matmul %86, %88, %cst {dimension_numbers = #tpu.dot_dimension_numbers<[1], [0], [0], [1], [0, 0, 1, 1], [], []>} : vector<8x72xbf16>, vector<72x512xbf16>, vector<8x512xf32> -> vector<8x512xf32>
    %c0_70 = arith.constant 0 : index
    %c0_71 = arith.constant 0 : index
    %90 = vector.load %arg4[%c0_70, %c0_71] : memref<8x1xf32, #tpu.memory_space<vmem>>, vector<8x1xf32>
    %91 = vector.broadcast %90 : vector<8x1xf32> to vector<8x512xf32>
    %92 = arith.mulf %89, %91 : vector<8x512xf32>
    %c0_72 = arith.constant 0 : index
    %c0_73 = arith.constant 0 : index
    %93 = vector.load %arg5[%c0_72, %c0_73] : memref<8x1xf32, #tpu.memory_space<vmem>>, vector<8x1xf32>
    %94 = vector.broadcast %93 : vector<8x1xf32> to vector<8x512xf32>
    %95 = arith.addf %92, %94 : vector<8x512xf32>
    %cst_74 = arith.constant 0.000000e+00 : f32
    %96 = vector.broadcast %cst_74 : f32 to vector<8x512xf32>
    %97 = arith.maximumf %95, %96 : vector<8x512xf32>
    %c0_75 = arith.constant 0 : index
    %c0_76 = arith.constant 0 : index
    %98 = vector.load %arg11[%c0_75, %c0_76] : memref<8x512xf32, #tpu.memory_space<vmem>>, vector<8x512xf32>
    tpu.vector_store %arg11[%c0_75, %c0_76], %97 {strides = array<i32>} : memref<8x512xf32, #tpu.memory_space<vmem>>, vector<8x512xf32>,
    %c0_77 = arith.constant 0 : index
    %c0_78 = arith.constant 0 : index
    %99 = vector.load %arg11[%c0_77, %c0_78] : memref<8x512xf32, #tpu.memory_space<vmem>>, vector<8x256xf32>
    %c17_i32_79 = arith.constant 17 : i32
    %100 = tpu.dynamic_rotate %99 by %c17_i32_79 dim 1 : vector<8x256xf32>, i32 -> vector<8x256xf32>
    %c0_80 = arith.constant 0 : index
    %c0_81 = arith.constant 0 : index
    %101 = vector.load %arg2[%c0_80, %c0_81] : memref<9x256xf32, #tpu.memory_space<vmem>>, vector<1x256xf32>
    %102 = vector.broadcast %101 : vector<1x256xf32> to vector<8x256xf32>
    %103 = arith.mulf %100, %102 : vector<8x256xf32>
    %c0_82 = arith.constant 0 : index
    %c0_83 = arith.constant 0 : index
    %104 = vector.load %arg10[%c0_82, %c0_83] : memref<72x512xf32, #tpu.memory_space<vmem>>, vector<8x256xf32>
    tpu.vector_store %arg10[%c0_82, %c0_83], %103 {strides = array<i32>} : memref<72x512xf32, #tpu.memory_space<vmem>>, vector<8x256xf32>,
    %c16_i32_84 = arith.constant 16 : i32
    %105 = tpu.dynamic_rotate %99 by %c16_i32_84 dim 1 : vector<8x256xf32>, i32 -> vector<8x256xf32>
    %c1_85 = arith.constant 1 : index
    %c0_86 = arith.constant 0 : index
    %106 = vector.load %arg2[%c1_85, %c0_86] : memref<9x256xf32, #tpu.memory_space<vmem>>, vector<1x256xf32>
    %107 = vector.broadcast %106 : vector<1x256xf32> to vector<8x256xf32>
    %108 = arith.mulf %105, %107 : vector<8x256xf32>
    %c8_87 = arith.constant 8 : index
    %c0_88 = arith.constant 0 : index
    %109 = vector.load %arg10[%c8_87, %c0_88] : memref<72x512xf32, #tpu.memory_space<vmem>>, vector<8x256xf32>
    tpu.vector_store %arg10[%c8_87, %c0_88], %108 {strides = array<i32>} : memref<72x512xf32, #tpu.memory_space<vmem>>, vector<8x256xf32>,
    %c15_i32_89 = arith.constant 15 : i32
    %110 = tpu.dynamic_rotate %99 by %c15_i32_89 dim 1 : vector<8x256xf32>, i32 -> vector<8x256xf32>
    %c2_90 = arith.constant 2 : index
    %c0_91 = arith.constant 0 : index
    %111 = vector.load %arg2[%c2_90, %c0_91] : memref<9x256xf32, #tpu.memory_space<vmem>>, vector<1x256xf32>
    %112 = vector.broadcast %111 : vector<1x256xf32> to vector<8x256xf32>
    %113 = arith.mulf %110, %112 : vector<8x256xf32>
    %c16_92 = arith.constant 16 : index
    %c0_93 = arith.constant 0 : index
    %114 = vector.load %arg10[%c16_92, %c0_93] : memref<72x512xf32, #tpu.memory_space<vmem>>, vector<8x256xf32>
    tpu.vector_store %arg10[%c16_92, %c0_93], %113 {strides = array<i32>} : memref<72x512xf32, #tpu.memory_space<vmem>>, vector<8x256xf32>,
    %c1_i32_94 = arith.constant 1 : i32
    %115 = tpu.dynamic_rotate %99 by %c1_i32_94 dim 1 : vector<8x256xf32>, i32 -> vector<8x256xf32>
    %c3_95 = arith.constant 3 : index
    %c0_96 = arith.constant 0 : index
    %116 = vector.load %arg2[%c3_95, %c0_96] : memref<9x256xf32, #tpu.memory_space<vmem>>, vector<1x256xf32>
    %117 = vector.broadcast %116 : vector<1x256xf32> to vector<8x256xf32>
    %118 = arith.mulf %115, %117 : vector<8x256xf32>
    %c24_97 = arith.constant 24 : index
    %c0_98 = arith.constant 0 : index
    %119 = vector.load %arg10[%c24_97, %c0_98] : memref<72x512xf32, #tpu.memory_space<vmem>>, vector<8x256xf32>
    tpu.vector_store %arg10[%c24_97, %c0_98], %118 {strides = array<i32>} : memref<72x512xf32, #tpu.memory_space<vmem>>, vector<8x256xf32>,
    %c32_99 = arith.constant 32 : index
    %c0_100 = arith.constant 0 : index
    %120 = vector.load %arg10[%c32_99, %c0_100] : memref<72x512xf32, #tpu.memory_space<vmem>>, vector<8x256xf32>
    tpu.vector_store %arg10[%c32_99, %c0_100], %99 {strides = array<i32>} : memref<72x512xf32, #tpu.memory_space<vmem>>, vector<8x256xf32>,
    %c255_i32_101 = arith.constant 255 : i32
    %121 = tpu.dynamic_rotate %99 by %c255_i32_101 dim 1 : vector<8x256xf32>, i32 -> vector<8x256xf32>
    %c5_102 = arith.constant 5 : index
    %c0_103 = arith.constant 0 : index
    %122 = vector.load %arg2[%c5_102, %c0_103] : memref<9x256xf32, #tpu.memory_space<vmem>>, vector<1x256xf32>
    %123 = vector.broadcast %122 : vector<1x256xf32> to vector<8x256xf32>
    %124 = arith.mulf %121, %123 : vector<8x256xf32>
    %c40_104 = arith.constant 40 : index
    %c0_105 = arith.constant 0 : index
    %125 = vector.load %arg10[%c40_104, %c0_105] : memref<72x512xf32, #tpu.memory_space<vmem>>, vector<8x256xf32>
    tpu.vector_store %arg10[%c40_104, %c0_105], %124 {strides = array<i32>} : memref<72x512xf32, #tpu.memory_space<vmem>>, vector<8x256xf32>,
    %c241_i32_106 = arith.constant 241 : i32
    %126 = tpu.dynamic_rotate %99 by %c241_i32_106 dim 1 : vector<8x256xf32>, i32 -> vector<8x256xf32>
    %c6_107 = arith.constant 6 : index
    %c0_108 = arith.constant 0 : index
    %127 = vector.load %arg2[%c6_107, %c0_108] : memref<9x256xf32, #tpu.memory_space<vmem>>, vector<1x256xf32>
    %128 = vector.broadcast %127 : vector<1x256xf32> to vector<8x256xf32>
    %129 = arith.mulf %126, %128 : vector<8x256xf32>
    %c48_109 = arith.constant 48 : index
    %c0_110 = arith.constant 0 : index
    %130 = vector.load %arg10[%c48_109, %c0_110] : memref<72x512xf32, #tpu.memory_space<vmem>>, vector<8x256xf32>
    tpu.vector_store %arg10[%c48_109, %c0_110], %129 {strides = array<i32>} : memref<72x512xf32, #tpu.memory_space<vmem>>, vector<8x256xf32>,
    %c240_i32_111 = arith.constant 240 : i32
    %131 = tpu.dynamic_rotate %99 by %c240_i32_111 dim 1 : vector<8x256xf32>, i32 -> vector<8x256xf32>
    %c7_112 = arith.constant 7 : index
    %c0_113 = arith.constant 0 : index
    %132 = vector.load %arg2[%c7_112, %c0_113] : memref<9x256xf32, #tpu.memory_space<vmem>>, vector<1x256xf32>
    %133 = vector.broadcast %132 : vector<1x256xf32> to vector<8x256xf32>
    %134 = arith.mulf %131, %133 : vector<8x256xf32>
    %c56_114 = arith.constant 56 : index
    %c0_115 = arith.constant 0 : index
    %135 = vector.load %arg10[%c56_114, %c0_115] : memref<72x512xf32, #tpu.memory_space<vmem>>, vector<8x256xf32>
    tpu.vector_store %arg10[%c56_114, %c0_115], %134 {strides = array<i32>} : memref<72x512xf32, #tpu.memory_space<vmem>>, vector<8x256xf32>,
    %c239_i32_116 = arith.constant 239 : i32
    %136 = tpu.dynamic_rotate %99 by %c239_i32_116 dim 1 : vector<8x256xf32>, i32 -> vector<8x256xf32>
    %c8_117 = arith.constant 8 : index
    %c0_118 = arith.constant 0 : index
    %137 = vector.load %arg2[%c8_117, %c0_118] : memref<9x256xf32, #tpu.memory_space<vmem>>, vector<1x256xf32>
    %138 = vector.broadcast %137 : vector<1x256xf32> to vector<8x256xf32>
    %139 = arith.mulf %136, %138 : vector<8x256xf32>
    %c64_119 = arith.constant 64 : index
    %c0_120 = arith.constant 0 : index
    %140 = vector.load %arg10[%c64_119, %c0_120] : memref<72x512xf32, #tpu.memory_space<vmem>>, vector<8x256xf32>
    tpu.vector_store %arg10[%c64_119, %c0_120], %139 {strides = array<i32>} : memref<72x512xf32, #tpu.memory_space<vmem>>, vector<8x256xf32>,
    %c0_121 = arith.constant 0 : index
    %c256_122 = arith.constant 256 : index
    %141 = vector.load %arg11[%c0_121, %c256_122] : memref<8x512xf32, #tpu.memory_space<vmem>>, vector<8x256xf32>
    %c17_i32_123 = arith.constant 17 : i32
    %142 = tpu.dynamic_rotate %141 by %c17_i32_123 dim 1 : vector<8x256xf32>, i32 -> vector<8x256xf32>
    %c0_124 = arith.constant 0 : index
    %c0_125 = arith.constant 0 : index
    %143 = vector.load %arg2[%c0_124, %c0_125] : memref<9x256xf32, #tpu.memory_space<vmem>>, vector<1x256xf32>
    %144 = vector.broadcast %143 : vector<1x256xf32> to vector<8x256xf32>
    %145 = arith.mulf %142, %144 : vector<8x256xf32>
    %c0_126 = arith.constant 0 : index
    %c256_127 = arith.constant 256 : index
    %146 = vector.load %arg10[%c0_126, %c256_127] : memref<72x512xf32, #tpu.memory_space<vmem>>, vector<8x256xf32>
    tpu.vector_store %arg10[%c0_126, %c256_127], %145 {strides = array<i32>} : memref<72x512xf32, #tpu.memory_space<vmem>>, vector<8x256xf32>,
    %c16_i32_128 = arith.constant 16 : i32
    %147 = tpu.dynamic_rotate %141 by %c16_i32_128 dim 1 : vector<8x256xf32>, i32 -> vector<8x256xf32>
    %c1_129 = arith.constant 1 : index
    %c0_130 = arith.constant 0 : index
    %148 = vector.load %arg2[%c1_129, %c0_130] : memref<9x256xf32, #tpu.memory_space<vmem>>, vector<1x256xf32>
    %149 = vector.broadcast %148 : vector<1x256xf32> to vector<8x256xf32>
    %150 = arith.mulf %147, %149 : vector<8x256xf32>
    %c8_131 = arith.constant 8 : index
    %c256_132 = arith.constant 256 : index
    %151 = vector.load %arg10[%c8_131, %c256_132] : memref<72x512xf32, #tpu.memory_space<vmem>>, vector<8x256xf32>
    tpu.vector_store %arg10[%c8_131, %c256_132], %150 {strides = array<i32>} : memref<72x512xf32, #tpu.memory_space<vmem>>, vector<8x256xf32>,
    %c15_i32_133 = arith.constant 15 : i32
    %152 = tpu.dynamic_rotate %141 by %c15_i32_133 dim 1 : vector<8x256xf32>, i32 -> vector<8x256xf32>
    %c2_134 = arith.constant 2 : index
    %c0_135 = arith.constant 0 : index
    %153 = vector.load %arg2[%c2_134, %c0_135] : memref<9x256xf32, #tpu.memory_space<vmem>>, vector<1x256xf32>
    %154 = vector.broadcast %153 : vector<1x256xf32> to vector<8x256xf32>
    %155 = arith.mulf %152, %154 : vector<8x256xf32>
    %c16_136 = arith.constant 16 : index
    %c256_137 = arith.constant 256 : index
    %156 = vector.load %arg10[%c16_136, %c256_137] : memref<72x512xf32, #tpu.memory_space<vmem>>, vector<8x256xf32>
    tpu.vector_store %arg10[%c16_136, %c256_137], %155 {strides = array<i32>} : memref<72x512xf32, #tpu.memory_space<vmem>>, vector<8x256xf32>,
    %c1_i32_138 = arith.constant 1 : i32
    %157 = tpu.dynamic_rotate %141 by %c1_i32_138 dim 1 : vector<8x256xf32>, i32 -> vector<8x256xf32>
    %c3_139 = arith.constant 3 : index
    %c0_140 = arith.constant 0 : index
    %158 = vector.load %arg2[%c3_139, %c0_140] : memref<9x256xf32, #tpu.memory_space<vmem>>, vector<1x256xf32>
    %159 = vector.broadcast %158 : vector<1x256xf32> to vector<8x256xf32>
    %160 = arith.mulf %157, %159 : vector<8x256xf32>
    %c24_141 = arith.constant 24 : index
    %c256_142 = arith.constant 256 : index
    %161 = vector.load %arg10[%c24_141, %c256_142] : memref<72x512xf32, #tpu.memory_space<vmem>>, vector<8x256xf32>
    tpu.vector_store %arg10[%c24_141, %c256_142], %160 {strides = array<i32>} : memref<72x512xf32, #tpu.memory_space<vmem>>, vector<8x256xf32>,
    %c32_143 = arith.constant 32 : index
    %c256_144 = arith.constant 256 : index
    %162 = vector.load %arg10[%c32_143, %c256_144] : memref<72x512xf32, #tpu.memory_space<vmem>>, vector<8x256xf32>
    tpu.vector_store %arg10[%c32_143, %c256_144], %141 {strides = array<i32>} : memref<72x512xf32, #tpu.memory_space<vmem>>, vector<8x256xf32>,
    %c255_i32_145 = arith.constant 255 : i32
    %163 = tpu.dynamic_rotate %141 by %c255_i32_145 dim 1 : vector<8x256xf32>, i32 -> vector<8x256xf32>
    %c5_146 = arith.constant 5 : index
    %c0_147 = arith.constant 0 : index
    %164 = vector.load %arg2[%c5_146, %c0_147] : memref<9x256xf32, #tpu.memory_space<vmem>>, vector<1x256xf32>
    %165 = vector.broadcast %164 : vector<1x256xf32> to vector<8x256xf32>
    %166 = arith.mulf %163, %165 : vector<8x256xf32>
    %c40_148 = arith.constant 40 : index
    %c256_149 = arith.constant 256 : index
    %167 = vector.load %arg10[%c40_148, %c256_149] : memref<72x512xf32, #tpu.memory_space<vmem>>, vector<8x256xf32>
    tpu.vector_store %arg10[%c40_148, %c256_149], %166 {strides = array<i32>} : memref<72x512xf32, #tpu.memory_space<vmem>>, vector<8x256xf32>,
    %c241_i32_150 = arith.constant 241 : i32
    %168 = tpu.dynamic_rotate %141 by %c241_i32_150 dim 1 : vector<8x256xf32>, i32 -> vector<8x256xf32>
    %c6_151 = arith.constant 6 : index
    %c0_152 = arith.constant 0 : index
    %169 = vector.load %arg2[%c6_151, %c0_152] : memref<9x256xf32, #tpu.memory_space<vmem>>, vector<1x256xf32>
    %170 = vector.broadcast %169 : vector<1x256xf32> to vector<8x256xf32>
    %171 = arith.mulf %168, %170 : vector<8x256xf32>
    %c48_153 = arith.constant 48 : index
    %c256_154 = arith.constant 256 : index
    %172 = vector.load %arg10[%c48_153, %c256_154] : memref<72x512xf32, #tpu.memory_space<vmem>>, vector<8x256xf32>
    tpu.vector_store %arg10[%c48_153, %c256_154], %171 {strides = array<i32>} : memref<72x512xf32, #tpu.memory_space<vmem>>, vector<8x256xf32>,
    %c240_i32_155 = arith.constant 240 : i32
    %173 = tpu.dynamic_rotate %141 by %c240_i32_155 dim 1 : vector<8x256xf32>, i32 -> vector<8x256xf32>
    %c7_156 = arith.constant 7 : index
    %c0_157 = arith.constant 0 : index
    %174 = vector.load %arg2[%c7_156, %c0_157] : memref<9x256xf32, #tpu.memory_space<vmem>>, vector<1x256xf32>
    %175 = vector.broadcast %174 : vector<1x256xf32> to vector<8x256xf32>
    %176 = arith.mulf %173, %175 : vector<8x256xf32>
    %c56_158 = arith.constant 56 : index
    %c256_159 = arith.constant 256 : index
    %177 = vector.load %arg10[%c56_158, %c256_159] : memref<72x512xf32, #tpu.memory_space<vmem>>, vector<8x256xf32>
    tpu.vector_store %arg10[%c56_158, %c256_159], %176 {strides = array<i32>} : memref<72x512xf32, #tpu.memory_space<vmem>>, vector<8x256xf32>,
    %c239_i32_160 = arith.constant 239 : i32
    %178 = tpu.dynamic_rotate %141 by %c239_i32_160 dim 1 : vector<8x256xf32>, i32 -> vector<8x256xf32>
    %c8_161 = arith.constant 8 : index
    %c0_162 = arith.constant 0 : index
    %179 = vector.load %arg2[%c8_161, %c0_162] : memref<9x256xf32, #tpu.memory_space<vmem>>, vector<1x256xf32>
    %180 = vector.broadcast %179 : vector<1x256xf32> to vector<8x256xf32>
    %181 = arith.mulf %178, %180 : vector<8x256xf32>
    %c64_163 = arith.constant 64 : index
    %c256_164 = arith.constant 256 : index
    %182 = vector.load %arg10[%c64_163, %c256_164] : memref<72x512xf32, #tpu.memory_space<vmem>>, vector<8x256xf32>
    tpu.vector_store %arg10[%c64_163, %c256_164], %181 {strides = array<i32>} : memref<72x512xf32, #tpu.memory_space<vmem>>, vector<8x256xf32>,
    %c0_165 = arith.constant 0 : index
    %c0_166 = arith.constant 0 : index
    %183 = vector.load %arg6[%c0_165, %c0_166] : memref<8x72xbf16, #tpu.memory_space<vmem>>, vector<8x72xbf16>
    %c0_167 = arith.constant 0 : index
    %c0_168 = arith.constant 0 : index
    %184 = vector.load %arg10[%c0_167, %c0_168] : memref<72x512xf32, #tpu.memory_space<vmem>>, vector<72x512xf32>
    %185 = arith.truncf %184 : vector<72x512xf32> to vector<72x512xbf16>
    %cst_169 = arith.constant dense<0.000000e+00> : vector<8x512xf32>
    %186 = tpu.matmul %183, %185, %cst_169 {dimension_numbers = #tpu.dot_dimension_numbers<[1], [0], [0], [1], [0, 0, 1, 1], [], []>} : vector<8x72xbf16>, vector<72x512xbf16>, vector<8x512xf32> -> vector<8x512xf32>
    %cst_170 = arith.constant 0.000000e+00 : f32
    %187 = vector.broadcast %cst_170 : f32 to vector<8x512xf32>
    %188 = arith.maximumf %186, %187 : vector<8x512xf32>
    %c0_171 = arith.constant 0 : index
    %c0_172 = arith.constant 0 : index
    %189 = vector.load %arg7[%c0_171, %c0_172] : memref<8x1xf32, #tpu.memory_space<vmem>>, vector<8x1xf32>
    %190 = vector.broadcast %189 : vector<8x1xf32> to vector<8x512xf32>
    %191 = arith.mulf %188, %190 : vector<8x512xf32>
    %c0_173 = arith.constant 0 : index
    %c0_174 = arith.constant 0 : index
    %192 = vector.load %arg8[%c0_173, %c0_174] : memref<8x1xf32, #tpu.memory_space<vmem>>, vector<8x1xf32>
    %193 = vector.broadcast %192 : vector<8x1xf32> to vector<8x512xf32>
    %194 = arith.addf %191, %193 : vector<8x512xf32>
    %195 = vector.extract_strided_slice %194 {offsets = [0, 0], sizes = [8, 256], strides = [1, 1]} : vector<8x512xf32> to vector<8x256xf32>
    %c0_175 = arith.constant 0 : index
    %c0_176 = arith.constant 0 : index
    %c0_177 = arith.constant 0 : index
    %196 = vector.load %arg1[%c0_175, %c0_176, %c0_177] : memref<2x8x256xf32, #tpu.memory_space<vmem>>, vector<1x8x256xf32>
    %197 = vector.shape_cast %196 : vector<1x8x256xf32> to vector<8x256xf32>
    %198 = arith.addf %195, %197 : vector<8x256xf32>
    %cst_178 = arith.constant 0.000000e+00 : f32
    %199 = vector.broadcast %cst_178 : f32 to vector<8x256xf32>
    %200 = arith.maximumf %198, %199 : vector<8x256xf32>
    %c0_179 = arith.constant 0 : index
    %c0_180 = arith.constant 0 : index
    %c0_181 = arith.constant 0 : index
    %201 = vector.load %arg9[%c0_179, %c0_180, %c0_181] : memref<2x8x256xf32, #tpu.memory_space<vmem>>, vector<1x8x256xf32>
    %202 = vector.shape_cast %201 : vector<1x8x256xf32> to vector<8x256xf32>
    %203 = vector.shape_cast %200 : vector<8x256xf32> to vector<1x8x256xf32>
    tpu.vector_store %arg9[%c0_179, %c0_180, %c0_181], %203 {strides = array<i32>} : memref<2x8x256xf32, #tpu.memory_space<vmem>>, vector<1x8x256xf32>,
    %204 = vector.extract_strided_slice %194 {offsets = [0, 256], sizes = [8, 256], strides = [1, 1]} : vector<8x512xf32> to vector<8x256xf32>
    %c1_182 = arith.constant 1 : index
    %c0_183 = arith.constant 0 : index
    %c0_184 = arith.constant 0 : index
    %205 = vector.load %arg1[%c1_182, %c0_183, %c0_184] : memref<2x8x256xf32, #tpu.memory_space<vmem>>, vector<1x8x256xf32>
    %206 = vector.shape_cast %205 : vector<1x8x256xf32> to vector<8x256xf32>
    %207 = arith.addf %204, %206 : vector<8x256xf32>
    %cst_185 = arith.constant 0.000000e+00 : f32
    %208 = vector.broadcast %cst_185 : f32 to vector<8x256xf32>
    %209 = arith.maximumf %207, %208 : vector<8x256xf32>
    %c1_186 = arith.constant 1 : index
    %c0_187 = arith.constant 0 : index
    %c0_188 = arith.constant 0 : index
    %210 = vector.load %arg9[%c1_186, %c0_187, %c0_188] : memref<2x8x256xf32, #tpu.memory_space<vmem>>, vector<1x8x256xf32>
    %211 = vector.shape_cast %210 : vector<1x8x256xf32> to vector<8x256xf32>
    %212 = vector.shape_cast %209 : vector<8x256xf32> to vector<1x8x256xf32>
    tpu.vector_store %arg9[%c1_186, %c0_187, %c0_188], %212 {strides = array<i32>} : memref<2x8x256xf32, #tpu.memory_space<vmem>>, vector<1x8x256xf32>,
    return
  }
  func.func @transform_0(%arg0: i32) -> (i32, i32, i32) {
    %c0_i32 = arith.constant 0 : i32
    %c0_i32_0 = arith.constant 0 : i32
    %c0_i32_1 = arith.constant 0 : i32
    return %arg0, %c0_i32, %c0_i32_0 : i32, i32, i32
  }
  func.func @transform_1(%arg0: i32) -> (i32, i32) {
    %c0_i32 = arith.constant 0 : i32
    %c0_i32_0 = arith.constant 0 : i32
    %c0_i32_1 = arith.constant 0 : i32
    return %c0_i32, %c0_i32_0 : i32, i32
  }
  func.func @transform_2(%arg0: i32) -> (i32, i32) {
    %c0_i32 = arith.constant 0 : i32
    %c0_i32_0 = arith.constant 0 : i32
    %c0_i32_1 = arith.constant 0 : i32
    return %c0_i32, %c0_i32_0 : i32, i32
  }
  func.func @transform_3(%arg0: i32) -> (i32, i32) {
    %c0_i32 = arith.constant 0 : i32
    %c0_i32_0 = arith.constant 0 : i32
    %c0_i32_1 = arith.constant 0 : i32
    return %c0_i32, %c0_i32_0 : i32, i32
  }
  func.func @transform_4(%arg0: i32) -> (i32, i32) {
    %c0_i32 = arith.constant 0 : i32
    %c0_i32_0 = arith.constant 0 : i32
    %c0_i32_1 = arith.constant 0 : i32
    return %c0_i32, %c0_i32_0 : i32, i32
  }
  func.func @transform_5(%arg0: i32) -> (i32, i32) {
    %c0_i32 = arith.constant 0 : i32
    %c0_i32_0 = arith.constant 0 : i32
    %c0_i32_1 = arith.constant 0 : i32
    return %c0_i32, %c0_i32_0 : i32, i32
  }
  func.func @transform_6(%arg0: i32) -> (i32, i32) {
    %c0_i32 = arith.constant 0 : i32
    %c0_i32_0 = arith.constant 0 : i32
    %c0_i32_1 = arith.constant 0 : i32
    return %c0_i32, %c0_i32_0 : i32, i32
  }
  func.func @transform_7(%arg0: i32) -> (i32, i32) {
    %c0_i32 = arith.constant 0 : i32
    %c0_i32_0 = arith.constant 0 : i32
    %c0_i32_1 = arith.constant 0 : i32
    return %c0_i32, %c0_i32_0 : i32, i32
  }
  func.func @transform_8(%arg0: i32) -> (i32, i32, i32) {
    %c0_i32 = arith.constant 0 : i32
    %c0_i32_0 = arith.constant 0 : i32
    %c0_i32_1 = arith.constant 0 : i32
    return %arg0, %c0_i32, %c0_i32_0 : i32, i32, i32
  }
}

</mosaic_0001>

<bundles_post_ra>
// kernel: tpu_custom_call.1
= control target key start
LH: loop header
LB: loop body
LE: loop exit
PB: predicated region body
PF: predicated region fallthrough
CT: control target
= control target key end

     0   :  { %13 = vsyncpa [#allocation5], 0  ;;  %s1461_s0 = inlined_call_operand.hbm [shape: f32[2,8,256], index: 0, kind: input, shape index: {}]   ;;  %s1462_s1 = inlined_call_operand.hbm [shape: f32[9,256], index: 1, kind: input, shape index: {}]   ;;  %s1463_s2 = inlined_call_operand.vmem [shape: bf16[8,72], index: 2, kind: input, shape index: {}]   ;;  %s1464_s3 = inlined_call_operand.vmem [shape: f32[8,1], index: 3, kind: input, shape index: {}]   ;;  %s1465_s4 = inlined_call_operand.vmem [shape: f32[8,1], index: 4, kind: input, shape index: {}]   ;;  %s1466_s5 = inlined_call_operand.vmem [shape: bf16[8,72], index: 5, kind: input, shape index: {}]   ;;  %s1467_s6 = inlined_call_operand.vmem [shape: f32[8,1], index: 6, kind: input, shape index: {}]   ;;  %s1468_s7 = inlined_call_operand.vmem [shape: f32[8,1], index: 7, kind: input, shape index: {}]   ;;  %s1469_s8 = inlined_call_operand.hbm [shape: f32[2,8,256], index: 8, kind: output, shape index: {}]  }
   0x1   :  { %14 = vsyncpa [#allocation8], 0 }
   0x2   :  { %15 = vsyncpa [#allocation6], 0  ;;  %s20_s29 = sshll.u32 %s1461_s0, 4  ;;  %s1053_s30 = smov [#allocation4]   ;;  %s21_s29 = int_to_ptr.hbm [resolvable:$true] %s20_s29 }
   0x3   :  { %s22_s9 = sshll.u32 %s1053_s30, 4  ;;  %s33_s12 = sshll.u32 %s1462_s1, 4  ;;  %s23_s9 = int_to_ptr.vmem [resolvable:$true] %s22_s9  ;;  %s34_s12 = int_to_ptr.hbm [resolvable:$true] %s33_s12 }
   0x4   :  { %s1054_s13 = smov 256   ;;  %s1055_s14 = smov 16  }
   0x5   :  { %28 = dma.hbm_to_vmem [thread:$0]  %s21_s29, 512, %s23_s9, [#allocation5], %s1054_s13, %s1054_s13, %s1055_s14  }
   0x6   :  { %s1056_s15 = smov [#allocation7]  }
   0x7   :  { %s35_s16 = sshll.u32 %s1056_s15, 4  ;;  %s36_s16 = int_to_ptr.vmem [resolvable:$true] %s35_s16 }
   0x8   :  { %41 = dma.hbm_to_vmem [thread:$0]  %s34_s12, 512, %s36_s16, [#allocation8], %s1054_s13, %s1054_s13, %s1055_s14  }
   0x9   :  { %1047 = dma.done.wait [#allocation5], 512  }
   0xa   :  { %1048 = vsyncadd [#allocation5], 4294966784 }
   0xb   :  { %1049 = dma.done.wait [#allocation8], 512  }
   0xc   :  { %1050 = vsyncadd [#allocation8], 4294966784  ;;  %v1123_v0 = vld [vmem:[#allocation4 + $0x10] sm:$0xff]  ;;  %s1057_s0 = smov 113   ;;  %s1058_s1 = smov 111   ;;  %v1131_v1 = vld [vmem:[#allocation4 + $0x18] sm:$0xff]  ;;  %v69_v6 = vlaneseq }
   0xd   :  { %297 = vrot.lane.b32.xlu1 %v1123_v0, %s1057_s0  ;;  %329 = vrot.lane.b32.xlu0 %v1123_v0, %s1058_s1  ;;  %s1059_s17 = smov 112   ;;  %v1139_v2 = vld [vmem:[#allocation4] sm:$0xff]  ;;  %s1060_s18 = smov 127   ;;  %v1147_v3 = vld [vmem:[#allocation4 + $0x8] sm:$0xff]  ;;  %vm406_vm3 = vcmask 1043456   ;;  %vm402_vm9 = vcmask 588800  }
   0xe   :  { %313 = vrot.lane.b32.xlu2 %v1123_v0, %s1059_s17  ;;  %s1061_s19 = smov 15   ;;  %s1062_s20 = smov 1   ;;  %v1195_v9 = vand.u32 127, %v69_v6  ;;  %v335_v10 = vld [vmem:[#allocation7 + $0x10] ss:$8 sm:$0x3] }
   0xf   :  { %s1063_s21 = smov 17   ;;  %v319_v12 = vld [vmem:[#allocation7 + $0x7] ss:$8 sm:$0x3]  ;;  %v337_v14 = vperm.slane %v335_v10, 0  ;;  %v338_v15 = vperm.slane %v335_v10, 1 }
  0x10   :  { %v303_v13 = vld [vmem:[#allocation7 + $0x6] ss:$8 sm:$0x3]  ;;  %vm180_vm0 = vcmp.lt.s32.totalorder %v1195_v9, 112  ;;  %vm198_vm1 = vcmp.lt.s32.totalorder %v1195_v9, 111  ;;  %vm162_vm2 = vcmp.lt.s32.totalorder %v1195_v9, 113 }
  0x11   :  { %v321_v16 = vperm.slane %v319_v12, 0  ;;  %v322_v17 = vperm.slane %v319_v12, 1  ;;  %v305_v18 = vperm.slane %v303_v13, 0  ;;  %v306_v19 = vperm.slane %v303_v13, 1  ;;  %s934_s10 = sshll.u32 %s1469_s8, 4  ;;  %s935_s10 = int_to_ptr.hbm [resolvable:$true] %s934_s10 }
  0x12   :  { %v287_v30 = vld [vmem:[#allocation7 + $0x5] ss:$8 sm:$0x3]  ;;  %vm144_vm4 = vcmp.lt.s32.totalorder %v1195_v9, 127  ;;  %vm106_vm5 = vcmp.lt.s32.totalorder %v1195_v9, 15  ;;  %vm124_vm6 = vcmp.lt.s32.totalorder %v1195_v9, 1 }
  0x13   :  { %v289_v40 = vperm.slane %v287_v30, 0  ;;  %v290_v41 = vperm.slane %v287_v30, 1  ;;  %v202_v50 = vld [vmem:[#allocation7 + $0x10] ss:$8 sm:$0x3]  ;;  %vm71_vm7 = vcmp.lt.s32.totalorder %v1195_v9, 17 }
  0x14   :  { %v204_v53 = vperm.slane %v202_v50, 0  ;;  %v205_v54 = vperm.slane %v202_v50, 1  ;;  %v253_v60 = vld [vmem:[#allocation7 + $0x2] ss:$8 sm:$0x3]  ;;  %vm88_vm8 = vcmp.lt.s32.totalorder %v1195_v9, 16 }
  0x15   :  { %299 = vrot.lane.b32.xlu1 %v1131_v1, %s1057_s0  ;;  %331 = vrot.lane.b32.xlu0 %v1131_v1, %s1058_s1  ;;  %v269_v63 = vld [vmem:[#allocation7 + $0x3] ss:$8 sm:$0x3] }
  0x16   :  { %315 = vrot.lane.b32.xlu2 %v1131_v1, %s1059_s17  ;;  %v272_v10 = vperm.slane %v269_v63, 1 }
  0x1d   :  { %283 = vrot.lane.b32.xlu1 %v1131_v1, %s1060_s18  ;;  %281 = vrot.lane.b32.xlu0 %v1123_v0, %s1060_s18 }
  0x1e   :  { %194 = vrot.lane.b32.xlu2 %v1139_v2, %s1058_s1 }
  0x25   :  { %247 = vrot.lane.b32.xlu1 %v1123_v0, %s1061_s19  ;;  %196 = vrot.lane.b32.xlu0 %v1147_v3, %s1058_s1 }
  0x26   :  { %249 = vrot.lane.b32.xlu2 %v1131_v1, %s1061_s19 }
  0x2d   :  { %265 = vrot.lane.b32.xlu1 %v1131_v1, %s1062_s20  ;;  %263 = vrot.lane.b32.xlu0 %v1123_v0, %s1062_s20 }
  0x2e   :  { %158 = vrot.lane.b32.xlu2 %v1139_v2, %s1057_s0 }
  0x35   :  { %160 = vrot.lane.b32.xlu0 %v1147_v3, %s1057_s0  ;;  %176 = vrot.lane.b32.xlu1 %v1139_v2, %s1059_s17 }
  0x36   :  { %178 = vrot.lane.b32.xlu2 %v1147_v3, %s1059_s17 }
  0x3d   :  { %215 = vrot.lane.b32.xlu0 %v1123_v0, %s1063_s21  ;;  %217 = vrot.lane.b32.xlu1 %v1131_v1, %s1063_s21 }
  0x3e   :  { %231 = vrot.lane.b32.xlu2 %v1123_v0, %s1055_s14 }
  0x45   :  { %233 = vrot.lane.b32.xlu0 %v1131_v1, %s1055_s14  ;;  %140 = vrot.lane.b32.xlu1 %v1139_v2, %s1060_s18 }
  0x46   :  { %142 = vrot.lane.b32.xlu2 %v1147_v3, %s1060_s18 }
  0x4d   :  { %102 = vrot.lane.b32.xlu0 %v1139_v2, %s1061_s19  ;;  %104 = vrot.lane.b32.xlu1 %v1147_v3, %s1061_s19 }
  0x4e   :  { %120 = vrot.lane.b32.xlu2 %v1139_v2, %s1062_s20 }
  0x55   :  { %122 = vrot.lane.b32.xlu0 %v1147_v3, %s1062_s20  ;;  %65 = vrot.lane.b32.xlu1 %v1139_v2, %s1063_s21 }
  0x56   :  { %67 = vrot.lane.b32.xlu2 %v1147_v3, %s1063_s21 }
  0x5d   :  { %84 = vrot.lane.b32.xlu0 %v1139_v2, %s1055_s14  ;;  %86 = vrot.lane.b32.xlu1 %v1147_v3, %s1055_s14 }
  0x68   :  { %v314_v4 = vpop.permute.xlu2 %313 }
  0x70   :  { %v316_v5 = vpop.permute.xlu2 %315 }
  0x71   :  { %v317_v22 = vsel %vm180_vm0, %v314_v4, %v316_v5  ;;  %v318_v23 = vsel %vm180_vm0, %v316_v5, %v314_v4  ;;  %v255_v4 = vperm.slane %v253_v60, 0  ;;  %v256_v5 = vperm.slane %v253_v60, 1 }
  0x72   :  { %v325_v33 = vmul.f32 %v321_v16, %v317_v22  ;;  %v326_v34 = vmul.f32 %v322_v17, %v318_v23  ;;  %v166_v22 = vld [vmem:[#allocation7 + $0x6] ss:$8 sm:$0x3]  ;;  %v184_v23 = vld [vmem:[#allocation7 + $0x7] ss:$8 sm:$0x3] }
  0x78   :  { %v195_v11 = vpop.permute.xlu2 %194 }
  0x7f   :  { %v298_v7 = vpop.permute.xlu1 %297  ;;  %v330_v8 = vpop.permute.xlu0 %329 }
  0x80   :  { %v250_v37 = vpop.permute.xlu2 %249 }
  0x87   :  { %v300_v20 = vpop.permute.xlu1 %299  ;;  %v332_v21 = vpop.permute.xlu0 %331 }
  0x88   :  { %v333_v24 = vsel %vm198_vm1, %v330_v8, %v332_v21  ;;  %v334_v25 = vsel %vm198_vm1, %v332_v21, %v330_v8  ;;  %v301_v26 = vsel %vm162_vm2, %v298_v7, %v300_v20  ;;  %v302_v27 = vsel %vm162_vm2, %v300_v20, %v298_v7  ;;  %v159_v55 = vpop.permute.xlu2 %158 }
  0x89   :  { %v341_v28 = vmul.f32 %v337_v14, %v333_v24  ;;  %v342_v29 = vmul.f32 %v338_v15, %v334_v25  ;;  %v309_v35 = vmul.f32 %v305_v18, %v301_v26  ;;  %v310_v36 = vmul.f32 %v306_v19, %v302_v27 }
  0x8a   :  { %v271_v8 = vperm.slane %v269_v63, 0  ;;  %v168_v26 = vperm.slane %v166_v22, 0  ;;  %v169_v27 = vperm.slane %v166_v22, 1 }
  0x8b   :  { %v400_v31 = vpack.c.bf16 %v341_v28, %v341_v28  ;;  %v401_v32 = vpack.c.bf16 %v342_v29, %v342_v29  ;;  %v396_v46 = vpack.c.bf16 %v325_v33, %v309_v35  ;;  %v397_v47 = vpack.c.bf16 %v326_v34, %v310_v36 }
  0x8c   :  { %v186_v28 = vperm.slane %v184_v23, 0  ;;  %v187_v29 = vperm.slane %v184_v23, 1 }
  0x8d   :  { %v414_v38 = vsel %vm406_vm3, %v400_v31, 0  ;;  %v417_v39 = vsel %vm406_vm3, %v401_v32, 0 }
  0x8e   :  { %448 = vmatpush.bf16.msra.mxu2 %v414_v38  ;;  %461 = vmatpush.bf16.msra.mxu3 %v417_v39 }
  0x8f   :  { %v284_v42 = vpop.permute.xlu1 %283  ;;  %v282_v43 = vpop.permute.xlu0 %281 }
  0x90   :  { %v285_v44 = vsel %vm144_vm4, %v282_v43, %v284_v42  ;;  %v286_v45 = vsel %vm144_vm4, %v284_v42, %v282_v43  ;;  %v179_v21 = vpop.permute.xlu2 %178 }
  0x91   :  { %v293_v48 = vmul.f32 %v289_v40, %v285_v44  ;;  %v294_v49 = vmul.f32 %v290_v41, %v286_v45  ;;  %v221_v45 = vld [vmem:[#allocation7] ss:$8 sm:$0x3] }
  0x92   :  { %449 = vmatpush.bf16.msra.mxu2 %v396_v46  ;;  %462 = vmatpush.bf16.msra.mxu3 %v397_v47  ;;  %v237_v46 = vld [vmem:[#allocation7 + $0x1] ss:$8 sm:$0x3]  ;;  %v148_v47 = vld [vmem:[#allocation7 + $0x5] ss:$8 sm:$0x3] }
  0x93   :  { %v392_v51 = vpack.c.bf16 %v293_v48, %v1123_v0  ;;  %v393_v52 = vpack.c.bf16 %v294_v49, %v1131_v1  ;;  %v223_v48 = vperm.slane %v221_v45, 0  ;;  %v224_v49 = vperm.slane %v221_v45, 1 }
  0x96   :  { %450 = vmatpush.bf16.msra.mxu2 %v392_v51  ;;  %463 = vmatpush.bf16.msra.mxu3 %v393_v52  ;;  %v239_v52 = vperm.slane %v237_v46, 0 }
  0x97   :  { %v248_v56 = vpop.permute.xlu1 %247  ;;  %v197_v57 = vpop.permute.xlu0 %196 }
  0x98   :  { %v199_v58 = vsel %vm198_vm1, %v195_v11, %v197_v57  ;;  %v200_v59 = vsel %vm198_vm1, %v197_v57, %v195_v11  ;;  %v251_v11 = vsel %vm106_vm5, %v248_v56, %v250_v37  ;;  %v252_v12 = vsel %vm106_vm5, %v250_v37, %v248_v56  ;;  %v232_v42 = vpop.permute.xlu2 %231 }
  0x99   :  { %v208_v61 = vmul.f32 %v204_v53, %v199_v58  ;;  %v209_v62 = vmul.f32 %v205_v54, %v200_v59  ;;  %v259_v17 = vmul.f32 %v255_v4, %v252_v12  ;;  %v260_v18 = vmul.f32 %v256_v5, %v251_v11 }
  0x9a   :  { %v240_v53 = vperm.slane %v237_v46, 1  ;;  %v150_v54 = vperm.slane %v148_v47, 0 }
  0x9b   :  { %v398_v0 = vpack.c.bf16 %v208_v61, %v208_v61  ;;  %v399_v1 = vpack.c.bf16 %v209_v62, %v209_v62 }
  0x9d   :  { %v408_v6 = vsel %vm406_vm3, %v398_v0, 0  ;;  %v411_v7 = vsel %vm406_vm3, %v399_v1, 0 }
  0x9e   :  { %422 = vmatpush.bf16.msra.mxu0 %v408_v6  ;;  %435 = vmatpush.bf16.msra.mxu1 %v411_v7  ;;  %v481_v7 = vld [vmem:[%s1465_s4] sm:$0xff] }
  0x9f   :  { %v266_v13 = vpop.permute.xlu1 %265  ;;  %v264_v14 = vpop.permute.xlu0 %263 }
  0xa0   :  { %v267_v15 = vsel %vm124_vm6, %v264_v14, %v266_v13  ;;  %v268_v16 = vsel %vm124_vm6, %v266_v13, %v264_v14  ;;  %v143_v56 = vpop.permute.xlu2 %142  ;;  %v1064_v13 = vmov 0   ;;  %v471_v14 = vld [vmem:[%s1464_s3] sm:$0xff] }
  0xa1   :  { %v275_v19 = vmul.f32 %v271_v8, %v268_v16  ;;  %v276_v20 = vmul.f32 %v272_v10, %v267_v15  ;;  %970 = vset.pattern.permute.xlu0 %v1064_v13  ;;  %969 = vset.pattern.permute.xlu2 %v1064_v13 }
  0xa2   :  { %484 = vperm.xlu0 %970, %v481_v7   ;;  %474 = vperm.xlu2 %969, %v471_v14  }
  0xa3   :  { %v388_v24 = vpack.c.bf16 %v275_v19, %v259_v17  ;;  %v389_v25 = vpack.c.bf16 %v276_v20, %v260_v18  ;;  %971 = vset.pattern.permute.xlu1 %v1064_v13  ;;  %v110_v17 = vld [vmem:[#allocation7 + $0x2] ss:$8 sm:$0x3]  ;;  %v128_v18 = vld [vmem:[#allocation7 + $0x3] ss:$8 sm:$0x3] }
  0xa4   :  { %v112_v19 = vperm.slane %v110_v17, 0  ;;  %v113_v20 = vperm.slane %v110_v17, 1  ;;  %v131_v22 = vperm.slane %v128_v18, 1  ;;  %v621_v17 = vld [vmem:[#allocation7 + $0x10] ss:$8 sm:$0x3] }
  0xa5   :  { %451 = vmatpush.bf16.msra.mxu2 %v388_v24  ;;  %464 = vmatpush.bf16.msra.mxu3 %v389_v25 }
  0xa7   :  { %v161_v30 = vpop.permute.xlu0 %160  ;;  %v177_v31 = vpop.permute.xlu1 %176 }
  0xa8   :  { %v163_v32 = vsel %vm162_vm2, %v159_v55, %v161_v30  ;;  %v164_v33 = vsel %vm162_vm2, %v161_v30, %v159_v55  ;;  %v181_v34 = vsel %vm180_vm0, %v177_v31, %v179_v21  ;;  %v182_v35 = vsel %vm180_vm0, %v179_v21, %v177_v31  ;;  %v121_v16 = vpop.permute.xlu2 %120 }
  0xa9   :  { %v172_v36 = vmul.f32 %v168_v26, %v163_v32  ;;  %v173_v37 = vmul.f32 %v169_v27, %v164_v33  ;;  %v190_v38 = vmul.f32 %v186_v28, %v181_v34  ;;  %v191_v39 = vmul.f32 %v187_v29, %v182_v35  ;;  %v74_v33 = vld [vmem:[#allocation7] ss:$8 sm:$0x3]  ;;  %v92_v34 = vld [vmem:[#allocation7 + $0x1] ss:$8 sm:$0x3] }
  0xaa   :  { %v151_v55 = vperm.slane %v148_v47, 1  ;;  %v130_v21 = vperm.slane %v128_v18, 0  ;;  %v623_v18 = vperm.slane %v621_v17, 0 }
  0xab   :  { %v394_v40 = vpack.c.bf16 %v190_v38, %v172_v36  ;;  %v395_v41 = vpack.c.bf16 %v191_v39, %v173_v37  ;;  %v76_v38 = vperm.slane %v74_v33, 0  ;;  %v77_v39 = vperm.slane %v74_v33, 1 }
  0xad   :  { %423 = vmatpush.bf16.msra.mxu0 %v394_v40  ;;  %436 = vmatpush.bf16.msra.mxu1 %v395_v41  ;;  %v94_v40 = vperm.slane %v92_v34, 0  ;;  %v95_v41 = vperm.slane %v92_v34, 1  ;;  %v589_v34 = vld [vmem:[#allocation7 + $0x6] ss:$8 sm:$0x3] }
  0xaf   :  { %v216_v43 = vpop.permute.xlu0 %215  ;;  %v218_v44 = vpop.permute.xlu1 %217 }
  0xb0   :  { %v219_v50 = vsel %vm71_vm7, %v216_v43, %v218_v44  ;;  %v220_v51 = vsel %vm71_vm7, %v218_v44, %v216_v43  ;;  %v68_v35 = vpop.permute.xlu2 %67 }
  0xb1   :  { %v227_v57 = vmul.f32 %v223_v48, %v220_v51  ;;  %v228_v58 = vmul.f32 %v224_v49, %v219_v50 }
  0xb7   :  { %v234_v59 = vpop.permute.xlu0 %233  ;;  %v141_v60 = vpop.permute.xlu1 %140 }
  0xb8   :  { %v235_v61 = vsel %vm88_vm8, %v232_v42, %v234_v59  ;;  %v236_v62 = vsel %vm88_vm8, %v234_v59, %v232_v42  ;;  %v145_v63 = vsel %vm144_vm4, %v141_v60, %v143_v56  ;;  %v146_v0 = vsel %vm144_vm4, %v143_v56, %v141_v60 }
  0xb9   :  { %v243_v1 = vmul.f32 %v239_v52, %v236_v62  ;;  %v244_v4 = vmul.f32 %v240_v53, %v235_v61  ;;  %v154_v5 = vmul.f32 %v150_v54, %v145_v63  ;;  %v155_v6 = vmul.f32 %v151_v55, %v146_v0 }
  0xbb   :  { %v390_v8 = vpack.c.bf16 %v154_v5, %v1139_v2  ;;  %v391_v10 = vpack.c.bf16 %v155_v6, %v1147_v3  ;;  %v384_v11 = vpack.c.bf16 %v243_v1, %v227_v57  ;;  %v385_v12 = vpack.c.bf16 %v244_v4, %v228_v58  ;;  %v345_v2 = vld [vmem:[%s1463_s2] sm:$0xf] }
  0xbd   :  { %424 = vmatpush.bf16.msra.mxu0 %v390_v8  ;;  %437 = vmatpush.bf16.msra.mxu1 %v391_v10 }
  0xbe   :  { %452 = vmatpush.bf16.msra.mxu2 %v384_v11  ;;  %465 = vmatpush.bf16.msra.mxu3 %v385_v12 }
  0xbf   :  { %v103_v3 = vpop.permute.xlu0 %102  ;;  %v105_v15 = vpop.permute.xlu1 %104 }
  0xc0   :  { %v107_v23 = vsel %vm106_vm5, %v103_v3, %v105_v15  ;;  %v108_v24 = vsel %vm106_vm5, %v105_v15, %v103_v3 }
  0xc1   :  { %950 = vmatmul.msk.bf16.vlgmr.msra.gmra.mxu2 %vm402_vm9, %v345_v2  ;;  %951 = vmatmul.msk.bf16.vlgmr.msra.gmra.mxu3 %vm402_vm9, %v345_v2  ;;  %v116_v29 = vmul.f32 %v112_v19, %v108_v24  ;;  %v117_v30 = vmul.f32 %v113_v20, %v107_v23  ;;  %v624_v19 = vperm.slane %v621_v17, 1 }
  0xc7   :  { %v123_v25 = vpop.permute.xlu0 %122  ;;  %v66_v26 = vpop.permute.xlu1 %65 }
  0xc8   :  { %v125_v27 = vsel %vm124_vm6, %v121_v16, %v123_v25  ;;  %v126_v28 = vsel %vm124_vm6, %v123_v25, %v121_v16  ;;  %v72_v42 = vsel %vm71_vm7, %v66_v26, %v68_v35  ;;  %v73_v43 = vsel %vm71_vm7, %v68_v35, %v66_v26  ;;  %v605_v35 = vld [vmem:[#allocation7 + $0x7] ss:$8 sm:$0x3] }
  0xc9   :  { %v134_v31 = vmul.f32 %v130_v21, %v126_v28  ;;  %v135_v32 = vmul.f32 %v131_v22, %v125_v27  ;;  %v80_v48 = vmul.f32 %v76_v38, %v73_v43  ;;  %v81_v49 = vmul.f32 %v77_v39, %v72_v42 }
  0xca   :  { %v592_v38 = vperm.slane %v589_v34, 1  ;;  %v608_v42 = vperm.slane %v605_v35, 1 }
  0xcb   :  { %v386_v36 = vpack.c.bf16 %v134_v31, %v116_v29  ;;  %v387_v37 = vpack.c.bf16 %v135_v32, %v117_v30 }
  0xcd   :  { %425 = vmatpush.bf16.msra.mxu0 %v386_v36  ;;  %438 = vmatpush.bf16.msra.mxu1 %v387_v37  ;;  %v753_v36 = vld [vmem:[#allocation7 + $0x10] ss:$8 sm:$0x3]  ;;  %v591_v37 = vperm.slane %v589_v34, 0 }
  0xce   :  { %v755_v43 = vperm.slane %v753_v36, 0 }
  0xcf   :  { %v85_v44 = vpop.permute.xlu0 %84  ;;  %v87_v45 = vpop.permute.xlu1 %86 }
  0xd0   :  { %v89_v46 = vsel %vm88_vm8, %v85_v44, %v87_v45  ;;  %v90_v47 = vsel %vm88_vm8, %v87_v45, %v85_v44  ;;  %v756_v44 = vperm.slane %v753_v36, 1  ;;  %v721_v36 = vld [vmem:[#allocation7 + $0x6] ss:$8 sm:$0x3] }
  0xd1   :  { %v98_v50 = vmul.f32 %v94_v40, %v90_v47  ;;  %v99_v51 = vmul.f32 %v95_v41, %v89_v46  ;;  %v607_v41 = vperm.slane %v605_v35, 0 }
  0xd3   :  { %v382_v52 = vpack.c.bf16 %v98_v50, %v80_v48  ;;  %v383_v53 = vpack.c.bf16 %v99_v51, %v81_v49 }
  0xd5   :  { %426 = vmatpush.bf16.msra.mxu0 %v382_v52  ;;  %439 = vmatpush.bf16.msra.mxu1 %v383_v53 }
  0xd8   :  { %948 = vmatmul.msk.bf16.vlgmr.msra.gmra.mxu0 %vm402_vm9, %v345_v2  ;;  %949 = vmatmul.msk.bf16.vlgmr.msra.gmra.mxu1 %vm402_vm9, %v345_v2  ;;  %v901_v2 = vld [vmem:[%s1468_s7] sm:$0xff] }
  0xfc   :  { %v475_v58 = vpop.permute.xlu2 %474 }
 0x114   :  { %v485_v59 = vpop.permute.xlu0 %484 }
 0x144   :  { %v454_v54 = vpop.f32.mrf.mxu2  ;;  %v467_v55 = vpop.f32.mrf.mxu3 }
 0x145   :  { %v479_v8 = vmul.f32 %v475_v58, %v454_v54  ;;  %v480_v12 = vmul.f32 %v475_v58, %v467_v55 }
 0x147   :  { %v489_v10 = vadd.f32 %v485_v59, %v479_v8  ;;  %v490_v13 = vadd.f32 %v485_v59, %v480_v12 }
 0x149   :  { %v1306_v11 = vmax.f32 %v489_v10, 0.0  ;;  %v1320_v14 = vmax.f32 %v490_v13, 0.0 }
 0x14c   :  { %v456_v56 = vpop.f32.mrf.mxu2  ;;  %v469_v57 = vpop.f32.mrf.mxu3 }
 0x155   :  { %v428_v60 = vpop.f32.mrf.mxu0  ;;  %v441_v61 = vpop.f32.mrf.mxu1 }
 0x156   :  { %v477_v62 = vmul.f32 %v475_v58, %v428_v60  ;;  %v478_v63 = vmul.f32 %v475_v58, %v441_v61  ;;  %v573_v58 = vld [vmem:[#allocation7 + $0x5] ss:$8 sm:$0x3] }
 0x158   :  { %v487_v0 = vadd.f32 %v485_v59, %v477_v62  ;;  %v488_v1 = vadd.f32 %v485_v59, %v478_v63  ;;  %v575_v63 = vperm.slane %v573_v58, 0 }
 0x15a   :  { %v1290_v4 = vmax.f32 %v487_v0, 0.0  ;;  %v1292_v5 = vmax.f32 %v488_v1, 0.0  ;;  %v576_v0 = vperm.slane %v573_v58, 1  ;;  %v687_v58 = vld [vmem:[#allocation7 + $0x3] ss:$8 sm:$0x3] }
 0x15c   :  { %585 = vrot.lane.b32.xlu1 %v1292_v5, %s1057_s0  ;;  %617 = vrot.lane.b32.xlu0 %v1292_v5, %s1058_s1 }
 0x15d   :  { %615 = vrot.lane.b32.xlu2 %v1290_v4, %s1058_s1  ;;  %v430_v6 = vpop.f32.mrf.mxu0  ;;  %v443_v7 = vpop.f32.mrf.mxu1 }
 0x164   :  { %549 = vrot.lane.b32.xlu1 %v1290_v4, %s1062_s20  ;;  %583 = vrot.lane.b32.xlu0 %v1290_v4, %s1057_s0 }
 0x165   :  { %599 = vrot.lane.b32.xlu2 %v1290_v4, %s1059_s17 }
 0x16c   :  { %747 = vrot.lane.b32.xlu1 %v1306_v11, %s1058_s1  ;;  %601 = vrot.lane.b32.xlu0 %v1292_v5, %s1059_s17 }
 0x16d   :  { %567 = vrot.lane.b32.xlu2 %v1290_v4, %s1060_s18 }
 0x174   :  { %715 = vrot.lane.b32.xlu1 %v1306_v11, %s1057_s0  ;;  %569 = vrot.lane.b32.xlu0 %v1292_v5, %s1060_s18 }
 0x175   :  { %533 = vrot.lane.b32.xlu2 %v1290_v4, %s1061_s19 }
 0x17c   :  { %733 = vrot.lane.b32.xlu1 %v1320_v14, %s1059_s17  ;;  %535 = vrot.lane.b32.xlu0 %v1292_v5, %s1061_s19 }
 0x17d   :  { %551 = vrot.lane.b32.xlu2 %v1292_v5, %s1062_s20 }
 0x184   :  { %699 = vrot.lane.b32.xlu1 %v1306_v11, %s1060_s18  ;;  %501 = vrot.lane.b32.xlu0 %v1290_v4, %s1063_s21 }
 0x185   :  { %749 = vrot.lane.b32.xlu2 %v1320_v14, %s1058_s1 }
 0x18c   :  { %665 = vrot.lane.b32.xlu1 %v1306_v11, %s1061_s19  ;;  %731 = vrot.lane.b32.xlu0 %v1306_v11, %s1059_s17 }
 0x18d   :  { %717 = vrot.lane.b32.xlu2 %v1320_v14, %s1057_s0 }
 0x194   :  { %683 = vrot.lane.b32.xlu1 %v1320_v14, %s1062_s20  ;;  %681 = vrot.lane.b32.xlu0 %v1306_v11, %s1062_s20 }
 0x195   :  { %701 = vrot.lane.b32.xlu2 %v1320_v14, %s1060_s18 }
 0x19c   :  { %633 = vrot.lane.b32.xlu1 %v1306_v11, %s1063_s21  ;;  %649 = vrot.lane.b32.xlu0 %v1306_v11, %s1055_s14 }
 0x19d   :  { %667 = vrot.lane.b32.xlu2 %v1320_v14, %s1061_s19 }
 0x1a4   :  { %651 = vrot.lane.b32.xlu1 %v1320_v14, %s1055_s14  ;;  %519 = vrot.lane.b32.xlu0 %v1292_v5, %s1055_s14 }
 0x1a5   :  { %635 = vrot.lane.b32.xlu2 %v1320_v14, %s1063_s21 }
 0x1ac   :  { %503 = vrot.lane.b32.xlu1 %v1292_v5, %s1063_s21 }
 0x1ad   :  { %517 = vrot.lane.b32.xlu2 %v1290_v4, %s1055_s14 }
 0x1b5   :  { %904 = vperm.xlu2 %969, %v901_v2  }
 0x1b7   :  { %v616_v3 = vpop.permute.xlu2 %615 }
 0x1bf   :  { %v600_v15 = vpop.permute.xlu2 %599 }
 0x1c7   :  { %v568_v16 = vpop.permute.xlu2 %567 }
 0x1ce   :  { %v586_v20 = vpop.permute.xlu1 %585  ;;  %v618_v21 = vpop.permute.xlu0 %617 }
 0x1cf   :  { %v619_v22 = vsel %vm198_vm1, %v616_v3, %v618_v21  ;;  %v620_v23 = vsel %vm198_vm1, %v618_v21, %v616_v3  ;;  %v1369_v24 = vpop.permute.xlu2 %533  ;;  %v555_v3 = vld [vmem:[#allocation7 + $0x3] ss:$8 sm:$0x3] }
 0x1d0   :  { %v627_v25 = vmul.f32 %v623_v18, %v619_v22  ;;  %v628_v26 = vmul.f32 %v624_v19, %v620_v23  ;;  %v557_v19 = vperm.slane %v555_v3, 0 }
 0x1d2   :  { %v816_v27 = vpack.c.bf16 %v627_v25, %v627_v25  ;;  %v817_v28 = vpack.c.bf16 %v628_v26, %v628_v26 }
 0x1d4   :  { %v824_v29 = vsel %vm406_vm3, %v816_v27, 0  ;;  %v827_v30 = vsel %vm406_vm3, %v817_v28, 0 }
 0x1d5   :  { %838 = vmatpush.bf16.msrb.mxu0 %v824_v29  ;;  %851 = vmatpush.bf16.msrb.mxu1 %v827_v30 }
 0x1d6   :  { %v550_v31 = vpop.permute.xlu1 %549  ;;  %v584_v32 = vpop.permute.xlu0 %583 }
 0x1d7   :  { %v552_v33 = vpop.permute.xlu2 %551  ;;  %v587_v39 = vsel %vm162_vm2, %v584_v32, %v586_v20  ;;  %v588_v40 = vsel %vm162_vm2, %v586_v20, %v584_v32  ;;  %v558_v20 = vperm.slane %v555_v3, 1 }
 0x1d8   :  { %v595_v47 = vmul.f32 %v591_v37, %v587_v39  ;;  %v596_v48 = vmul.f32 %v592_v38, %v588_v40  ;;  %v553_v23 = vsel %vm124_vm6, %v550_v31, %v552_v33  ;;  %v737_v38 = vld [vmem:[#allocation7 + $0x7] ss:$8 sm:$0x3]  ;;  %v705_v39 = vld [vmem:[#allocation7 + $0x5] ss:$8 sm:$0x3] }
 0x1d9   :  { %v562_v29 = vmul.f32 %v558_v20, %v553_v23  ;;  %v723_v40 = vperm.slane %v721_v36, 0 }
 0x1de   :  { %v748_v45 = vpop.permute.xlu1 %747  ;;  %v602_v46 = vpop.permute.xlu0 %601 }
 0x1df   :  { %v603_v49 = vsel %vm180_vm0, %v600_v15, %v602_v46  ;;  %v604_v50 = vsel %vm180_vm0, %v602_v46, %v600_v15  ;;  %v750_v51 = vpop.permute.xlu2 %749  ;;  %v539_v15 = vld [vmem:[#allocation7 + $0x2] ss:$8 sm:$0x3]  ;;  %v708_v46 = vperm.slane %v705_v39, 1 }
 0x1e0   :  { %v611_v52 = vmul.f32 %v607_v41, %v603_v49  ;;  %v612_v53 = vmul.f32 %v608_v42, %v604_v50  ;;  %v751_v54 = vsel %vm198_vm1, %v748_v45, %v750_v51  ;;  %v752_v55 = vsel %vm198_vm1, %v750_v51, %v748_v45 }
 0x1e1   :  { %v759_v56 = vmul.f32 %v755_v43, %v751_v54  ;;  %v760_v57 = vmul.f32 %v756_v44, %v752_v55  ;;  %v541_v21 = vperm.slane %v539_v15, 0  ;;  %v542_v22 = vperm.slane %v539_v15, 1  ;;  %v671_v55 = vld [vmem:[#allocation7 + $0x2] ss:$8 sm:$0x3] }
 0x1e2   :  { %v812_v59 = vpack.c.bf16 %v611_v52, %v595_v47  ;;  %v813_v60 = vpack.c.bf16 %v612_v53, %v596_v48  ;;  %v724_v41 = vperm.slane %v721_v36, 1  ;;  %v739_v42 = vperm.slane %v737_v38, 0 }
 0x1e3   :  { %v818_v61 = vpack.c.bf16 %v759_v56, %v759_v56  ;;  %v819_v62 = vpack.c.bf16 %v760_v57, %v760_v57  ;;  %v740_v43 = vperm.slane %v737_v38, 1  ;;  %v707_v45 = vperm.slane %v705_v39, 0 }
 0x1e4   :  { %839 = vmatpush.bf16.msrb.mxu0 %v812_v59  ;;  %852 = vmatpush.bf16.msrb.mxu1 %v813_v60 }
 0x1e5   :  { %v830_v1 = vsel %vm406_vm3, %v818_v61, 0  ;;  %v833_v6 = vsel %vm406_vm3, %v819_v62, 0 }
 0x1e6   :  { %864 = vmatpush.bf16.msrb.mxu2 %v830_v1  ;;  %877 = vmatpush.bf16.msrb.mxu3 %v833_v6  ;;  %v716_v7 = vpop.permute.xlu1 %715  ;;  %v570_v8 = vpop.permute.xlu0 %569  ;;  %v674_v1 = vperm.slane %v671_v55, 1 }
 0x1e7   :  { %v571_v10 = vsel %vm144_vm4, %v568_v16, %v570_v8  ;;  %v572_v12 = vsel %vm144_vm4, %v570_v8, %v568_v16  ;;  %v554_v16 = vsel %vm124_vm6, %v552_v33, %v550_v31  ;;  %v718_v27 = vpop.permute.xlu2 %717  ;;  %v690_v8 = vperm.slane %v687_v58, 1 }
 0x1e8   :  { %v579_v13 = vmul.f32 %v575_v63, %v571_v10  ;;  %v580_v2 = vmul.f32 %v576_v0, %v572_v12  ;;  %v561_v28 = vmul.f32 %v557_v19, %v554_v16  ;;  %v720_v44 = vsel %vm162_vm2, %v718_v27, %v716_v7  ;;  %v891_v19 = vld [vmem:[%s1467_s6] sm:$0xff] }
 0x1e9   :  { %v728_v54 = vmul.f32 %v724_v41, %v720_v44  ;;  %v673_v0 = vperm.slane %v671_v55, 0  ;;  %894 = vperm.xlu1 %971, %v891_v19   ;;  %v507_v41 = vld [vmem:[#allocation7] ss:$8 sm:$0x3] }
 0x1ea   :  { %v808_v17 = vpack.c.bf16 %v579_v13, %v1290_v4  ;;  %v809_v18 = vpack.c.bf16 %v580_v2, %v1292_v5 }
 0x1ec   :  { %840 = vmatpush.bf16.msrb.mxu0 %v808_v17  ;;  %853 = vmatpush.bf16.msrb.mxu1 %v809_v18 }
 0x1ee   :  { %v734_v25 = vpop.permute.xlu1 %733  ;;  %v536_v26 = vpop.permute.xlu0 %535 }
 0x1ef   :  { %v537_v4 = vsel %vm106_vm5, %v1369_v24, %v536_v26  ;;  %v538_v5 = vsel %vm106_vm5, %v536_v26, %v1369_v24  ;;  %v702_v37 = vpop.permute.xlu2 %701  ;;  %v719_v24 = vsel %vm162_vm2, %v716_v7, %v718_v27  ;;  %v689_v7 = vperm.slane %v687_v58, 0  ;;  %v655_v26 = vld [vmem:[#allocation7 + $0x1] ss:$8 sm:$0x3] }
 0x1f0   :  { %v545_v30 = vmul.f32 %v541_v21, %v538_v5  ;;  %v546_v32 = vmul.f32 %v542_v22, %v537_v4  ;;  %v727_v53 = vmul.f32 %v723_v40, %v719_v24  ;;  %v523_v40 = vld [vmem:[#allocation7 + $0x1] ss:$8 sm:$0x3] }
 0x1f2   :  { %v804_v34 = vpack.c.bf16 %v561_v28, %v545_v30  ;;  %v805_v35 = vpack.c.bf16 %v562_v29, %v546_v32  ;;  %v657_v28 = vperm.slane %v655_v26, 0  ;;  %v658_v29 = vperm.slane %v655_v26, 1  ;;  %v974_v26 = vld [vmem:[#allocation4] sm:$0xff] }
 0x1f4   :  { %841 = vmatpush.bf16.msrb.mxu0 %v804_v34  ;;  %854 = vmatpush.bf16.msrb.mxu1 %v805_v35 }
 0x1f6   :  { %v700_v31 = vpop.permute.xlu1 %699  ;;  %v1403_v33 = vpop.permute.xlu0 %501 }
 0x1f7   :  { %v703_v49 = vsel %vm144_vm4, %v700_v31, %v702_v37  ;;  %v704_v50 = vsel %vm144_vm4, %v702_v37, %v700_v31  ;;  %v668_v63 = vpop.permute.xlu2 %667 }
 0x1f8   :  { %v711_v59 = vmul.f32 %v707_v45, %v703_v49  ;;  %v712_v60 = vmul.f32 %v708_v46, %v704_v50  ;;  %v525_v45 = vperm.slane %v523_v40, 0  ;;  %v526_v46 = vperm.slane %v523_v40, 1  ;;  %v763_v49 = vld [vmem:[%s1466_s5] sm:$0xf]  ;;  %s1065_s5 = smov [#allocation9]  }
 0x1f9   :  { %s932_s29 = sshll.u32 %s1065_s5, 4  ;;  %s933_s29 = int_to_ptr.vmem [resolvable:$true] %s932_s29 }
 0x1fa   :  { %v810_v2 = vpack.c.bf16 %v711_v59, %v1306_v11  ;;  %v811_v3 = vpack.c.bf16 %v712_v60, %v1320_v14 }
 0x1fe   :  { %v666_v47 = vpop.permute.xlu1 %665  ;;  %v732_v48 = vpop.permute.xlu0 %731 }
 0x1ff   :  { %v735_v51 = vsel %vm180_vm0, %v732_v48, %v734_v25  ;;  %v736_v52 = vsel %vm180_vm0, %v734_v25, %v732_v48  ;;  %v670_v6 = vsel %vm106_vm5, %v668_v63, %v666_v47  ;;  %v669_v10 = vsel %vm106_vm5, %v666_v47, %v668_v63  ;;  %v639_v25 = vld [vmem:[#allocation7] ss:$8 sm:$0x3]  ;;  %v636_v27 = vpop.permute.xlu2 %635 }
 0x200   :  { %v743_v56 = vmul.f32 %v739_v42, %v735_v51  ;;  %v744_v57 = vmul.f32 %v740_v43, %v736_v52  ;;  %v677_v15 = vmul.f32 %v673_v0, %v670_v6  ;;  %v678_v20 = vmul.f32 %v674_v1, %v669_v10 }
 0x201   :  { %v641_v4 = vperm.slane %v639_v25, 0  ;;  %v642_v5 = vperm.slane %v639_v25, 1  ;;  %v509_v47 = vperm.slane %v507_v41, 0  ;;  %v510_v48 = vperm.slane %v507_v41, 1 }
 0x202   :  { %v814_v61 = vpack.c.bf16 %v743_v56, %v727_v53  ;;  %v815_v62 = vpack.c.bf16 %v744_v57, %v728_v54 }
 0x204   :  { %865 = vmatpush.bf16.msrb.mxu2 %v814_v61  ;;  %878 = vmatpush.bf16.msrb.mxu3 %v815_v62 }
 0x206   :  { %v684_v12 = vpop.permute.xlu1 %683  ;;  %v682_v13 = vpop.permute.xlu0 %681 }
 0x207   :  { %v685_v17 = vsel %vm124_vm6, %v682_v13, %v684_v12  ;;  %v686_v18 = vsel %vm124_vm6, %v684_v12, %v682_v13  ;;  %v518_v44 = vpop.permute.xlu2 %517 }
 0x208   :  { %v693_v21 = vmul.f32 %v689_v7, %v686_v18  ;;  %v694_v22 = vmul.f32 %v690_v8, %v685_v17  ;;  %866 = vmatpush.bf16.msrb.mxu2 %v810_v2  ;;  %879 = vmatpush.bf16.msrb.mxu3 %v811_v3  ;;  %v912_v17 = vld [vmem:[#allocation4 + $0x8] sm:$0xff]  ;;  %v972_v18 = vld [vmem:[#allocation4 + $0x10] sm:$0xff] }
 0x20a   :  { %v806_v11 = vpack.c.bf16 %v693_v21, %v677_v15  ;;  %v807_v23 = vpack.c.bf16 %v694_v22, %v678_v20  ;;  %v973_v20 = vld [vmem:[#allocation4 + $0x18] sm:$0xff] }
 0x20c   :  { %867 = vmatpush.bf16.msrb.mxu2 %v806_v11  ;;  %880 = vmatpush.bf16.msrb.mxu3 %v807_v23 }
 0x20e   :  { %v634_v14 = vpop.permute.xlu1 %633  ;;  %v650_v16 = vpop.permute.xlu0 %649 }
 0x20f   :  { %v637_v30 = vsel %vm71_vm7, %v634_v14, %v636_v27  ;;  %v638_v32 = vsel %vm71_vm7, %v636_v27, %v634_v14  ;;  %v905_v12 = vpop.permute.xlu2 %904 }
 0x210   :  { %v645_v36 = vmul.f32 %v641_v4, %v638_v32  ;;  %v646_v37 = vmul.f32 %v642_v5, %v637_v30 }
 0x216   :  { %v652_v34 = vpop.permute.xlu1 %651  ;;  %v520_v42 = vpop.permute.xlu0 %519 }
 0x217   :  { %v653_v35 = vsel %vm88_vm8, %v650_v16, %v652_v34  ;;  %v654_v31 = vsel %vm88_vm8, %v652_v34, %v650_v16  ;;  %v521_v50 = vsel %vm88_vm8, %v518_v44, %v520_v42  ;;  %v522_v51 = vsel %vm88_vm8, %v520_v42, %v518_v44 }
 0x218   :  { %v661_v38 = vmul.f32 %v657_v28, %v654_v31  ;;  %v662_v39 = vmul.f32 %v658_v29, %v653_v35  ;;  %v529_v55 = vmul.f32 %v525_v45, %v522_v51  ;;  %v530_v56 = vmul.f32 %v526_v46, %v521_v50 }
 0x21a   :  { %v802_v43 = vpack.c.bf16 %v661_v38, %v645_v36  ;;  %v803_v24 = vpack.c.bf16 %v662_v39, %v646_v37 }
 0x21c   :  { %868 = vmatpush.bf16.msrb.mxu2 %v802_v43  ;;  %881 = vmatpush.bf16.msrb.mxu3 %v803_v24 }
 0x21e   :  { %v504_v52 = vpop.permute.xlu1 %503 }
 0x21f   :  { %v505_v53 = vsel %vm71_vm7, %v1403_v33, %v504_v52  ;;  %v506_v54 = vsel %vm71_vm7, %v504_v52, %v1403_v33  ;;  %954 = vmatmul.msk.bf16.vlgmr.msrb.gmra.mxu2 %vm402_vm9, %v763_v49  ;;  %955 = vmatmul.msk.bf16.vlgmr.msrb.gmra.mxu3 %vm402_vm9, %v763_v49 }
 0x220   :  { %v513_v57 = vmul.f32 %v509_v47, %v506_v54  ;;  %v514_v58 = vmul.f32 %v510_v48, %v505_v53 }
 0x222   :  { %v800_v59 = vpack.c.bf16 %v529_v55, %v513_v57  ;;  %v801_v60 = vpack.c.bf16 %v530_v56, %v514_v58 }
 0x224   :  { %842 = vmatpush.bf16.msrb.mxu0 %v800_v59  ;;  %855 = vmatpush.bf16.msrb.mxu1 %v801_v60 }
 0x227   :  { %952 = vmatmul.msk.bf16.vlgmr.msrb.gmra.mxu0 %vm402_vm9, %v763_v49  ;;  %953 = vmatmul.msk.bf16.vlgmr.msrb.gmra.mxu1 %vm402_vm9, %v763_v49 }
 0x25b   :  { %v895_v61 = vpop.permute.xlu1 %894 }
 0x2a2   :  { %v870_v62 = vpop.f32.mrf.mxu2  ;;  %v883_v9 = vpop.f32.mrf.mxu3 }
 0x2a3   :  { %v889_v33 = vmax.f32 %v870_v62, 0.0  ;;  %v890_v63 = vmax.f32 %v883_v9, 0.0 }
 0x2a4   :  { %v844_v0 = vpop.f32.mrf.mxu0  ;;  %v857_v1 = vpop.f32.mrf.mxu1 }
 0x2a5   :  { %v899_v6 = vmul.f32 %v895_v61, %v889_v33  ;;  %v900_v7 = vmul.f32 %v895_v61, %v890_v63  ;;  %v887_v8 = vmax.f32 %v844_v0, 0.0  ;;  %v888_v10 = vmax.f32 %v857_v1, 0.0 }
 0x2a7   :  { %v909_v13 = vadd.f32 %v905_v12, %v899_v6  ;;  %v910_v2 = vadd.f32 %v905_v12, %v900_v7  ;;  %v897_v3 = vmul.f32 %v895_v61, %v887_v8  ;;  %v898_v15 = vmul.f32 %v895_v61, %v888_v10 }
 0x2a9   :  { %v921_v19 = vadd.f32 %v972_v18, %v909_v13  ;;  %v922_v21 = vadd.f32 %v973_v20, %v910_v2  ;;  %v907_v22 = vadd.f32 %v905_v12, %v897_v3  ;;  %v908_v11 = vadd.f32 %v905_v12, %v898_v15 }
 0x2aa   :  { %v872_v23 = vpop.f32.mrf.mxu2  ;;  %v885_v14 = vpop.f32.mrf.mxu3 }
 0x2ab   :  { %v923_v16 = vmax.f32 %v921_v19, 0.0  ;;  %v924_v25 = vmax.f32 %v922_v21, 0.0  ;;  %v913_v27 = vadd.f32 %v974_v26, %v907_v22  ;;  %v914_v4 = vadd.f32 %v912_v17, %v908_v11 }
 0x2ac   :  { %v846_v5 = vpop.f32.mrf.mxu0  ;;  %v859_v28 = vpop.f32.mrf.mxu1 }
 0x2ad   :  { %926 = vst [vmem:[#allocation9 + $0x10] sm:$0xff] %v923_v16  ;;  %v915_v29 = vmax.f32 %v913_v27, 0.0  ;;  %v916_v30 = vmax.f32 %v914_v4, 0.0 }
 0x2ae   :  { %927 = vst [vmem:[#allocation9 + $0x18] sm:$0xff] %v924_v25 }
 0x2af   :  { %917 = vst [vmem:[#allocation9] sm:$0xff] %v915_v29 }
 0x2b0   :  { %918 = vst [vmem:[#allocation9 + $0x8] sm:$0xff] %v916_v30 }
 0x2b1   :  { %940 = dma.vmem_to_hbm [thread:$0]  %s933_s29, 512, %s935_s10, [#allocation6], %s1054_s13, %s1054_s13, %s1055_s14  }
 0x2b2   :  { %1051 = dma.done.wait [#allocation6], 512  }
 0x2b3   :  { %1052 = vsyncadd [#allocation6], 4294966784 }
 0x2b4   :  { %945 = vsyncpa [#allocation5], 1 }
 0x2b5   :  { %946 = vsyncpa [#allocation8], 1 }
 0x2b6   :  { %947 = vsyncpa [#allocation6], 1 }

</bundles_post_ra>
